<compile_context>
chip_gen: v7x
topology: tpu7x:2x2x1
jax: 0.10.0
libtpu: 0.0.40
codegen_flags: <defaults>
</compile_context>

<pallas_src>
import functools
import math

import jax
import jax.numpy as jnp
from jax.experimental import pallas as pl
from jax.experimental.pallas import tpu as pltpu

# ----------------------------- model config ---------------------------------
INPUT_DIM = 13
SELF_STATE_DIM = 6
MLP1_DIMS = [64, 32]          # mlp1 (tanh after every layer, last_relu=True)
MLP2_DIMS = [32, 32]          # mlp2 (no tanh after last)
ATTENTION_DIMS = [32, 32, 1]  # attention MLP (no tanh after last)
MLP_ACTOR_DIMS = [32, 2]      # actor head (no tanh after last)
MLP_CRITIC_DIMS = [32, 1]     # critic head (no tanh after last)
WITH_GLOBAL_STATE = True
INIT_STD = 0.5
ANNEALING_RATE = 1e-3

F32 = jnp.float32

H1 = MLP1_DIMS[-1]            # mlp1 feature / global-state dim (32)
H2 = MLP2_DIMS[-1]            # pairwise feature dim (32)
A1, A2 = ATTENTION_DIMS[0], ATTENTION_DIMS[1]
FUSED2 = MLP2_DIMS[0] + A1    # fused (mlp2 layer-1 | attention layer-1) width (64)
assert MLP_ACTOR_DIMS[0] == MLP_CRITIC_DIMS[0], "head fusion needs equal hidden widths"
HH = MLP_CRITIC_DIMS[0]       # per-head hidden width (32)
HEAD1 = 2 * HH                # fused actor+critic hidden width (64)
LANES = 128                   # lane width of the packed slabs / fused output
assert MLP_CRITIC_DIMS[-1] + MLP_ACTOR_DIMS[-1] <= LANES
ROW_ALIGN = 16                # bf16 sublane tile -> every slab segment is tile-aligned
MATMUL_DTYPE = jnp.bfloat16   # MXU operand dtype
OUT_DTYPE = jnp.bfloat16      # fused output dtype (halves writeback traffic)


def _round_up(x, m):
    return ((x + m - 1) // m) * m


# ------------------------- packed-slab layout (static) ----------------------
_W_SEGS = [
    # (name, rows (= in_features), cols (= out_features))
    ("w1a", INPUT_DIM, MLP1_DIMS[0]),
    ("w1b", MLP1_DIMS[0], MLP1_DIMS[1]),
    ("w2att", H1, FUSED2),             # fused mlp2-layer1 | attention-layer1 (h1 rows)
    ("w2b", MLP2_DIMS[0], MLP2_DIMS[1]),
    ("wa1_g", H1, FUSED2),             # attention layer-1 global-state rows, left half zero
    ("wa2", A1, A2),
    ("wh1_s", SELF_STATE_DIM, HEAD1),  # fused critic|actor layer-1, self-state rows
    ("wh1_f", H2, HEAD1),              # fused critic|actor layer-1, feature rows
    ("wh2", HEAD1, LANES),             # fused, zero-padded critic|actor layer-2
]
W_OFF = {}
_r = 0
for _name, _k, _n in _W_SEGS:
    W_OFF[_name] = (_r, _k, _n)
    _r += _round_up(_k, ROW_ALIGN)
W_SLAB_ROWS = _round_up(_r, ROW_ALIGN)        # 320

_B_SEGS = [("b1a", MLP1_DIMS[0]), ("b1b", MLP1_DIMS[1]), ("b2att", FUSED2),
           ("b2b", MLP2_DIMS[1]), ("ba2", A2), ("ba3", ATTENTION_DIMS[2]),
           ("wa3t", A2), ("bh1", HEAD1), ("bh2", LANES)]
B_ROW = {name: (i, width) for i, (name, width) in enumerate(_B_SEGS)}
B_SLAB_ROWS = _round_up(len(_B_SEGS), 8)      # 16


# ------------------------------- kernel -------------------------------------
def _ac_kernel(state_ref, wslab_ref, bslab_ref, out_ref, *, n_real, act_dtype):
    x = state_ref[...]                                  # (TB, N_pad, D) f32
    tb, n_pad, d = x.shape
    inv_n = 1.0 / n_real                                # Python const -> VPU multiply

    def wslice(name):
        off, k, n = W_OFF[name]
        return wslab_ref[off:off + k, 0:n]              # static slice -> (k, n) bf16

    def bias(name):
        row, width = B_ROW[name]
        return bslab_ref[row:row + 1, 0:width]          # (1, width) f32

    def mm(xv, name):
        w = wslice(name)
        if xv.dtype != w.dtype:                         # activations are already bf16
            xv = xv.astype(w.dtype)
        return jnp.dot(xv, w, preferred_element_type=jnp.float32)

    def act(y):                                         # tanh in the chip-appropriate dtype;
        return jnp.tanh(y.astype(act_dtype))            # result feeds the next MXU directly

    self_state = x[:, 0, :SELF_STATE_DIM]               # (TB, S) f32
    xf = x.reshape(tb * n_pad, d)                       # N_pad % 8 == 0 -> clean merge

    # mlp1: Linear-Tanh-Linear-Tanh (last_relu=True)
    h = act(mm(xf, "w1a") + bias("b1a"))                # (TB*N_pad, 64)
    h1 = act(mm(h, "w1b") + bias("b1b"))                # (TB*N_pad, H1)

    # global state: masked mean over the *real* humans, computed per batch row
    human_mask = (jax.lax.broadcasted_iota(jnp.int32, (tb, n_pad, 1), 1)
                  < n_real).astype(F32)                 # (TB, N_pad, 1)
    h1_f32 = h1.astype(F32)
    g_b = jnp.sum(h1_f32.reshape(tb, n_pad, H1) * human_mask, axis=1) * inv_n  # (TB, H1)
    g_att = mm(g_b, "wa1_g")                            # (TB, 64); lanes 0:32 are zero
    g_flat = jnp.broadcast_to(g_att[:, None, :],
                              (tb, n_pad, FUSED2)).reshape(tb * n_pad, FUSED2)

    # fused (mlp2 layer-1 | attention layer-1) over h1: one matmul, one 64-lane tanh
    fused = act(mm(h1, "w2att") + g_flat + bias("b2att"))   # (TB*N_pad, 64)
    h2 = fused[:, :MLP2_DIMS[0]]                        # mlp2 branch
    a = fused[:, MLP2_DIMS[0]:]                         # attention branch

    mlp2_out = mm(h2, "w2b") + bias("b2b")              # (TB*N_pad, H2) f32
    a = act(mm(a, "wa2") + bias("ba2"))                 # (TB*N_pad, A2)
    # attention score (1 output lane): VPU multiply + lane reduce instead of MXU
    scores = (jnp.sum(a.astype(F32) * bias("wa3t"), axis=-1, keepdims=True)
              + bias("ba3"))                            # (TB*N_pad, 1) f32

    # softmax-style weighting with the reference's (scores != 0) mask; padded
    # humans are additionally masked out.  (No max-subtraction, to keep the
    # exact reference semantics.)  The divide is folded into one reciprocal.
    s3 = scores.reshape(tb, n_pad, 1)
    scores_exp = jnp.exp(s3) * (s3 != 0.0).astype(F32) * human_mask
    feats = mlp2_out.reshape(tb, n_pad, H2)
    inv_denom = pl.reciprocal(jnp.sum(scores_exp, axis=1), approx=True)   # (TB, 1)
    weighted_feature = jnp.sum(scores_exp * feats, axis=1) * inv_denom    # (TB, H2)

    # fused actor+critic heads -> single lane-dense (TB, 128) bf16 output
    cp = act(mm(self_state, "wh1_s") + mm(weighted_feature, "wh1_f")
             + bias("bh1"))                             # (TB, 64): [:,:32]=critic, [:,32:]=actor
    out_ref[...] = (mm(cp, "wh2") + bias("bh2")).astype(out_ref.dtype)


# ------------------------- parameter initialization -------------------------
def init_params(key):
    """PyTorch-style uniform(-1/sqrt(fan_in), +1/sqrt(fan_in)); W is (in, out)."""
    def linear(k, fan_in, fan_out):
        kw, kb = jax.random.split(k)
        bound = 1.0 / math.sqrt(fan_in)
        w = jax.random.uniform(kw, (fan_in, fan_out), F32, -bound, bound)
        b = jax.random.uniform(kb, (1, fan_out), F32, -bound, bound)
        return w, b

    keys = jax.random.split(key, 11)
    raw = {}
    raw["w1a"], raw["b1a"] = linear(keys[0], INPUT_DIM, MLP1_DIMS[0])
    raw["w1b"], raw["b1b"] = linear(keys[1], MLP1_DIMS[0], MLP1_DIMS[1])
    raw["w2a"], raw["b2a"] = linear(keys[2], MLP1_DIMS[1], MLP2_DIMS[0])
    raw["w2b"], raw["b2b"] = linear(keys[3], MLP2_DIMS[0], MLP2_DIMS[1])
    att_in = MLP1_DIMS[-1] * 2 if WITH_GLOBAL_STATE else MLP1_DIMS[-1]
    raw["wa1"], raw["ba1"] = linear(keys[4], att_in, ATTENTION_DIMS[0])
    raw["wa2"], raw["ba2"] = linear(keys[5], ATTENTION_DIMS[0], ATTENTION_DIMS[1])
    raw["wa3"], raw["ba3"] = linear(keys[6], ATTENTION_DIMS[1], ATTENTION_DIMS[2])
    f_dim = MLP2_DIMS[-1] + SELF_STATE_DIM
    raw["wc1"], raw["bc1"] = linear(keys[7], f_dim, MLP_CRITIC_DIMS[0])
    raw["wc2"], raw["bc2"] = linear(keys[8], MLP_CRITIC_DIMS[0], MLP_CRITIC_DIMS[1])
    raw["wp1"], raw["bp1"] = linear(keys[9], f_dim, MLP_ACTOR_DIMS[0])
    raw["wp2"], raw["bp2"] = linear(keys[10], MLP_ACTOR_DIMS[0], MLP_ACTOR_DIMS[1])
    return raw


def pack_params(raw, matmul_dtype=MATMUL_DTYPE):
    """Fuse layers / split concats and pack everything into two slabs."""
    c_out, a_out = MLP_CRITIC_DIMS[-1], MLP_ACTOR_DIMS[-1]
    s = SELF_STATE_DIM

    wa1_h, wa1_g = raw["wa1"][:H1], raw["wa1"][H1:]
    # Fused (mlp2 layer-1 | attention layer-1) acting on h1 -> one (H1, 64) matmul.
    w2att = jnp.concatenate([raw["w2a"], wa1_h], axis=1)        # (H1, 64)
    b2att = jnp.concatenate([raw["b2a"], raw["ba1"]], axis=1)   # (1, 64)
    # Global-state rows of attention layer-1, pre-padded to 64 lanes (left half 0)
    # so the kernel adds it directly to the fused pre-activation.
    wa1_g64 = jnp.zeros((H1, FUSED2), F32).at[:, MLP2_DIMS[0]:].set(wa1_g)

    # Fused actor+critic heads.
    wh1 = jnp.concatenate([raw["wc1"], raw["wp1"]], axis=1)     # (S+H2, 64)
    wh1_s, wh1_f = wh1[:s], wh1[s:]
    bh1 = jnp.concatenate([raw["bc1"], raw["bp1"]], axis=1)     # (1, 64)
    wh2 = jnp.zeros((HEAD1, LANES), F32)
    wh2 = wh2.at[:HH, 0:c_out].set(raw["wc2"])
    wh2 = wh2.at[HH:, c_out:c_out + a_out].set(raw["wp2"])
    bh2 = jnp.zeros((1, LANES), F32)
    bh2 = bh2.at[:, 0:c_out].set(raw["bc2"])
    bh2 = bh2.at[:, c_out:c_out + a_out].set(raw["bp2"])

    # wa3 (A2, 1) stored transposed as a bias row; values pre-rounded through the
    # matmul dtype so the in-kernel VPU multiply + lane reduce matches an MXU
    # bf16 matmul's products.
    wa3t = raw["wa3"].astype(matmul_dtype).astype(F32).T        # (1, A2)

    weights = dict(w1a=raw["w1a"], w1b=raw["w1b"], w2att=w2att, w2b=raw["w2b"],
                   wa1_g=wa1_g64, wa2=raw["wa2"],
                   wh1_s=wh1_s, wh1_f=wh1_f, wh2=wh2)
    biases = dict(b1a=raw["b1a"], b1b=raw["b1b"], b2att=b2att, b2b=raw["b2b"],
                  ba2=raw["ba2"], ba3=raw["ba3"], wa3t=wa3t, bh1=bh1, bh2=bh2)

    wslab = jnp.zeros((W_SLAB_ROWS, LANES), F32)
    for name, (off, k, n) in W_OFF.items():
        w = weights[name]
        assert w.shape == (k, n), (name, w.shape, (k, n))
        wslab = wslab.at[off:off + k, :n].set(w)
    wslab = wslab.astype(matmul_dtype)

    bslab = jnp.zeros((B_SLAB_ROWS, LANES), F32)
    for name, (row, width) in B_ROW.items():
        b = biases[name]
        assert b.shape == (1, width), (name, b.shape, width)
        bslab = bslab.at[row:row + 1, :width].set(b)
    return wslab, bslab


# -------------------------------- wrapper ------------------------------------
def _default_act_dtype():
    """bf16 tanh/exp only on chips with a bf16 VPU/EUP (v6e/v7x); f32 elsewhere."""
    try:
        kind = jax.devices()[0].device_kind.lower()
    except Exception:
        return F32
    if any(tag in kind for tag in ("v6", "v7", "7x")):
        return jnp.bfloat16
    return F32


def actor_critic_forward(state, packed_params, time, *, tile_b=512, act_dtype=None,
                         out_dtype=OUT_DTYPE):
    """Returns (value, (dist_mean, dist_std)) like the torch module's forward."""
    wslab, bslab = packed_params
    if act_dtype is None:
        act_dtype = _default_act_dtype()
    b, n, d = state.shape
    assert d == INPUT_DIM
    n_pad = _round_up(n, 8)
    b8 = _round_up(b, 8)

    # Batch tiling: VMEM-budgeted and megacore-aware.  Keep the grid >= 2 steps
    # whenever possible (v7x shards them across its 2 TCs; the state DMA can
    # pipeline), and cap the tile so live VMEM stays ~<20 MiB (v7x = 64 MiB phys).
    if b8 <= 8:
        tile = b8                                       # single block == full array
    else:
        align = 16                                      # bf16-output sublane tile
        vmem_cap = max(align,
                       (20 * 1024 * 1024) // (6 * 1024 * n_pad) // align * align)
        grid_cap = _round_up(pl.cdiv(b8, 2), align)     # ensures >= 2 grid steps
        tile = max(align, min(_round_up(tile_b, align), vmem_cap, grid_cap))
    b_pad = _round_up(b8, tile)
    grid = (b_pad // tile,)

    # Host-side padding: batch -> multiple of tile, humans -> multiple of 8.
    state_p = jnp.zeros((b_pad, n_pad, d), F32).at[:b, :n, :].set(state)

    # Advisory cost estimate so XLA schedules this small call sensibly.
    per_human = 2 * (d * MLP1_DIMS[0] + MLP1_DIMS[0] * H1 + H1 * FUSED2
                     + MLP2_DIMS[0] * H2 + A1 * A2 + A2)
    per_batch = 2 * (H1 * FUSED2 + SELF_STATE_DIM * HEAD1 + H2 * HEAD1 + HEAD1 * LANES)
    flops = b_pad * (n_pad * per_human + per_batch)
    transcendentals = b_pad * (n_pad * (MLP1_DIMS[0] + H1 + FUSED2 + A2 + 1) + HEAD1 + 1)
    bytes_accessed = (state_p.size * 4 + wslab.size * wslab.dtype.itemsize
                      + bslab.size * 4 + b_pad * LANES * jnp.dtype(out_dtype).itemsize)

    out = pl.pallas_call(
        functools.partial(_ac_kernel, n_real=n, act_dtype=act_dtype),
        out_shape=jax.ShapeDtypeStruct((b_pad, LANES), out_dtype),
        grid=grid,
        in_specs=[
            pl.BlockSpec((tile, n_pad, d), lambda i: (i, 0, 0)),    # state tile
            pl.BlockSpec((W_SLAB_ROWS, LANES), lambda i: (0, 0)),   # resident weights
            pl.BlockSpec((B_SLAB_ROWS, LANES), lambda i: (0, 0)),   # resident biases
        ],
        out_specs=pl.BlockSpec((tile, LANES), lambda i: (i, 0)),    # lane-dense output
        compiler_params=pltpu.CompilerParams(
            dimension_semantics=("parallel",),
            vmem_limit_bytes=32 * 1024 * 1024),
        cost_estimate=pl.CostEstimate(flops=flops,
                                      transcendentals=transcendentals,
                                      bytes_accessed=bytes_accessed),
    )(state_p, wslab, bslab)

    c_out = MLP_CRITIC_DIMS[-1]
    value = out[:b, 0:c_out].astype(F32)
    dist_mean = out[:b, c_out:c_out + MLP_ACTOR_DIMS[-1]].astype(F32)

    # Std annealing is Python scalar math, exactly as in the torch module
    # (breaks if `time` is traced -- same limitation as the original).
    if time == 0:
        dist_std = INIT_STD
    else:
        dist_std = max(INIT_STD * math.exp(-ANNEALING_RATE * float(time)), 0.01)
    # TODO(synk): torch.distributions.MultivariateNormal has no Pallas
    # equivalent; we return its parameters (mean, isotropic std) instead.
    return value, (dist_mean, dist_std)


# ------------------------- pure-JAX reference (check) ------------------------
def _reference(state, raw, mm_dtype=jnp.float32, act_dtype=jnp.float32):
    """Faithful reference with the original concat structure; matmul operands
    are cast to `mm_dtype` (f32 accumulation) and activations to `act_dtype`."""
    def dot(a_, b_):
        return jnp.dot(a_.astype(mm_dtype), b_.astype(mm_dtype),
                       preferred_element_type=jnp.float32)

    def act(y):
        return jnp.tanh(y.astype(act_dtype))

    b, n, d = state.shape
    s = SELF_STATE_DIM
    self_state = state[:, 0, :s]
    xf = state.reshape(b * n, d)
    h = act(dot(xf, raw["w1a"]) + raw["b1a"])
    h1 = act(dot(h, raw["w1b"]) + raw["b1b"])
    h2 = act(dot(h1, raw["w2a"]) + raw["b2a"])
    mlp2_out = dot(h2, raw["w2b"]) + raw["b2b"]
    g = jnp.mean(h1.astype(F32).reshape(b, n, H1), axis=1, keepdims=True)
    g = jnp.broadcast_to(g, (b, n, H1)).reshape(b * n, H1)
    att_in = jnp.concatenate([h1.astype(F32), g], axis=1)
    a = act(dot(att_in, raw["wa1"]) + raw["ba1"])
    a = act(dot(a, raw["wa2"]) + raw["ba2"])
    scores = dot(a, raw["wa3"]) + raw["ba3"]
    se = (jnp.exp(scores) * (scores != 0.0).astype(F32)).reshape(b, n, 1)
    w = se / jnp.sum(se, axis=1, keepdims=True)
    wf = jnp.sum(w * mlp2_out.reshape(b, n, H2), axis=1)
    joint = jnp.concatenate([self_state, wf], axis=1)
    c = act(dot(joint, raw["wc1"]) + raw["bc1"])
    value = dot(c, raw["wc2"]) + raw["bc2"]
    p = act(dot(joint, raw["wp1"]) + raw["bp1"])
    mean = dot(p, raw["wp2"]) + raw["bp2"]
    return value, mean


# --------------------------------- main --------------------------------------
if __name__ == "__main__":
    key = jax.random.PRNGKey(0)
    pkey, skey1, skey2 = jax.random.split(key, 3)
    raw_params = init_params(pkey)
    packed = pack_params(raw_params)
    act_dtype = _default_act_dtype()

    # Small shapes consistent with the module: batch=2, humans=5, rotated dim=13.
    B, N = 2, 5
    state = jax.random.normal(skey1, (B, N, INPUT_DIM), F32)
    value, (dist_mean, dist_std) = actor_critic_forward(state, packed, time=3)
    value = jax.block_until_ready(value)
    dist_mean = jax.block_until_ready(dist_mean)

    assert value.shape == (B, MLP_CRITIC_DIMS[-1])
    assert dist_mean.shape == (B, MLP_ACTOR_DIMS[-1])

    # Check vs. a reference using the same matmul/activation dtypes.
    v_ref, m_ref = _reference(state, raw_params, MATMUL_DTYPE, act_dtype)
    assert jnp.allclose(value, v_ref, rtol=3e-2, atol=5e-3), (value, v_ref)
    assert jnp.allclose(dist_mean, m_ref, rtol=3e-2, atol=5e-3), (dist_mean, m_ref)

    # Loose sanity check vs. the full-f32 reference (tolerance covers the bf16
    # matmul operands / activations / output recommended in the perf review).
    v_f32, m_f32 = _reference(state, raw_params, jnp.float32, jnp.float32)
    assert jnp.allclose(value, v_f32, rtol=1e-1, atol=5e-2), (value, v_f32)
    assert jnp.allclose(dist_mean, m_f32, rtol=1e-1, atol=5e-2), (dist_mean, m_f32)
    assert 0.01 <= dist_std <= INIT_STD

    # Larger batch exercising the megacore-aware batch grid (b_pad=32, grid=(2,)).
    B2 = 20
    state2 = jax.random.normal(skey2, (B2, N, INPUT_DIM), F32)
    value2, (mean2, std2) = actor_critic_forward(state2, packed, time=0)
    value2 = jax.block_until_ready(value2)
    mean2 = jax.block_until_ready(mean2)
    v2_ref, m2_ref = _reference(state2, raw_params, MATMUL_DTYPE, act_dtype)
    assert value2.shape == (B2, MLP_CRITIC_DIMS[-1])
    assert jnp.allclose(value2, v2_ref, rtol=3e-2, atol=5e-3), (value2, v2_ref)
    assert jnp.allclose(mean2, m2_ref, rtol=3e-2, atol=5e-3), (mean2, m2_ref)
    assert std2 == INIT_STD

    print("KERNEL_OK")
</pallas_src>

<mosaic_0001>
module attributes {stable_mosaic.version = 11 : i64} {
  func.func @_ac_kernel(%arg0: i32, %arg1: memref<8x8x13xf32, #tpu.memory_space<vmem>>, %arg2: memref<320x128xbf16, #tpu.memory_space<vmem>>, %arg3: memref<16x128xf32, #tpu.memory_space<vmem>>, %arg4: memref<8x128xbf16, #tpu.memory_space<vmem>>) attributes {dimension_semantics = [#tpu.dimension_semantics<parallel>], iteration_bounds = array<i64: 1>, scalar_prefetch = 0 : i64, scratch_operands = 0 : i64, tpu.core_type = #tpu.core_type<tc>, window_params = [{transform_indices = @transform_0, window_bounds = array<i64: 8, 8, 13>}, {pipeline_mode = #tpu.pipeline_mode<synchronous>, transform_indices = @transform_1, window_bounds = array<i64: 320, 128>}, {pipeline_mode = #tpu.pipeline_mode<synchronous>, transform_indices = @transform_2, window_bounds = array<i64: 16, 128>}, {transform_indices = @transform_3, window_bounds = array<i64: 8, 128>}]} {
    %c0 = arith.constant 0 : index
    %c0_0 = arith.constant 0 : index
    %c0_1 = arith.constant 0 : index
    %0 = vector.load %arg1[%c0, %c0_0, %c0_1] : memref<8x8x13xf32, #tpu.memory_space<vmem>>, vector<8x8x13xf32>
    %1 = vector.extract_strided_slice %0 {offsets = [0, 0, 0], sizes = [8, 1, 6], strides = [1, 1, 1]} : vector<8x8x13xf32> to vector<8x1x6xf32>
    %2 = vector.shape_cast %1 : vector<8x1x6xf32> to vector<8x6xf32>
    %3 = vector.shape_cast %0 : vector<8x8x13xf32> to vector<64x13xf32>
    %c0_2 = arith.constant 0 : index
    %c0_3 = arith.constant 0 : index
    %4 = vector.load %arg2[%c0_2, %c0_3] : memref<320x128xbf16, #tpu.memory_space<vmem>>, vector<13x64xbf16>
    %5 = arith.truncf %3 : vector<64x13xf32> to vector<64x13xbf16>
    %cst = arith.constant dense<0.000000e+00> : vector<64x64xf32>
    %6 = tpu.matmul %5, %4, %cst {dimension_numbers = #tpu.dot_dimension_numbers<[1], [0], [0], [1], [0, 0, 1, 1], [], []>} : vector<64x13xbf16>, vector<13x64xbf16>, vector<64x64xf32> -> vector<64x64xf32>
    %c0_4 = arith.constant 0 : index
    %c0_5 = arith.constant 0 : index
    %7 = vector.load %arg3[%c0_4, %c0_5] : memref<16x128xf32, #tpu.memory_space<vmem>>, vector<1x64xf32>
    %8 = vector.broadcast %7 : vector<1x64xf32> to vector<64x64xf32>
    %9 = arith.addf %6, %8 : vector<64x64xf32>
    %10 = math.tanh %9 : vector<64x64xf32>
    %c16 = arith.constant 16 : index
    %c0_6 = arith.constant 0 : index
    %11 = vector.load %arg2[%c16, %c0_6] : memref<320x128xbf16, #tpu.memory_space<vmem>>, vector<64x32xbf16>
    %12 = arith.truncf %10 : vector<64x64xf32> to vector<64x64xbf16>
    %cst_7 = arith.constant dense<0.000000e+00> : vector<64x32xf32>
    %13 = tpu.matmul %12, %11, %cst_7 {dimension_numbers = #tpu.dot_dimension_numbers<[1], [0], [0], [1], [0, 0, 1, 1], [], []>} : vector<64x64xbf16>, vector<64x32xbf16>, vector<64x32xf32> -> vector<64x32xf32>
    %c1 = arith.constant 1 : index
    %c0_8 = arith.constant 0 : index
    %14 = vector.load %arg3[%c1, %c0_8] : memref<16x128xf32, #tpu.memory_space<vmem>>, vector<1x32xf32>
    %15 = vector.broadcast %14 : vector<1x32xf32> to vector<64x32xf32>
    %16 = arith.addf %13, %15 : vector<64x32xf32>
    %17 = math.tanh %16 : vector<64x32xf32>
    %18 = tpu.iota {dimensions = array<i32: 1>} : vector<8x8x1xi32>
    %c5_i32 = arith.constant 5 : i32
    %19 = vector.broadcast %c5_i32 : i32 to vector<8x8x1xi32>
    %20 = arith.cmpi slt, %18, %19 : vector<8x8x1xi32>
    %21 = arith.extui %20 : vector<8x8x1xi1> to vector<8x8x1xi32>
    %22 = arith.sitofp %21 : vector<8x8x1xi32> to vector<8x8x1xf32>
    %23 = vector.shape_cast %17 : vector<64x32xf32> to vector<8x8x32xf32>
    %24 = vector.broadcast %22 : vector<8x8x1xf32> to vector<8x8x32xf32>
    %25 = arith.mulf %23, %24 : vector<8x8x32xf32>
    %cst_9 = arith.constant dense<0.000000e+00> : vector<8x32xf32>
    %26 = vector.multi_reduction <add>, %25, %cst_9 [1] : vector<8x8x32xf32> to vector<8x32xf32>
    %cst_10 = arith.constant 2.000000e-01 : f32
    %27 = vector.broadcast %cst_10 : f32 to vector<8x32xf32>
    %28 = arith.mulf %26, %27 : vector<8x32xf32>
    %c144 = arith.constant 144 : index
    %c0_11 = arith.constant 0 : index
    %29 = vector.load %arg2[%c144, %c0_11] : memref<320x128xbf16, #tpu.memory_space<vmem>>, vector<32x64xbf16>
    %30 = arith.truncf %28 : vector<8x32xf32> to vector<8x32xbf16>
    %cst_12 = arith.constant dense<0.000000e+00> : vector<8x64xf32>
    %31 = tpu.matmul %30, %29, %cst_12 {dimension_numbers = #tpu.dot_dimension_numbers<[1], [0], [0], [1], [0, 0, 1, 1], [], []>} : vector<8x32xbf16>, vector<32x64xbf16>, vector<8x64xf32> -> vector<8x64xf32>
    %32 = vector.shape_cast %31 : vector<8x64xf32> to vector<8x1x64xf32>
    %33 = vector.shape_cast %32 : vector<8x1x64xf32> to vector<8x1x64xf32>
    %34 = vector.broadcast %33 : vector<8x1x64xf32> to vector<8x8x64xf32>
    %35 = vector.shape_cast %34 : vector<8x8x64xf32> to vector<64x64xf32>
    %c80 = arith.constant 80 : index
    %c0_13 = arith.constant 0 : index
    %36 = vector.load %arg2[%c80, %c0_13] : memref<320x128xbf16, #tpu.memory_space<vmem>>, vector<32x64xbf16>
    %37 = arith.truncf %17 : vector<64x32xf32> to vector<64x32xbf16>
    %cst_14 = arith.constant dense<0.000000e+00> : vector<64x64xf32>
    %38 = tpu.matmul %37, %36, %cst_14 {dimension_numbers = #tpu.dot_dimension_numbers<[1], [0], [0], [1], [0, 0, 1, 1], [], []>} : vector<64x32xbf16>, vector<32x64xbf16>, vector<64x64xf32> -> vector<64x64xf32>
    %39 = arith.addf %38, %35 : vector<64x64xf32>
    %c2 = arith.constant 2 : index
    %c0_15 = arith.constant 0 : index
    %40 = vector.load %arg3[%c2, %c0_15] : memref<16x128xf32, #tpu.memory_space<vmem>>, vector<1x64xf32>
    %41 = vector.broadcast %40 : vector<1x64xf32> to vector<64x64xf32>
    %42 = arith.addf %39, %41 : vector<64x64xf32>
    %43 = math.tanh %42 : vector<64x64xf32>
    %44 = vector.extract_strided_slice %43 {offsets = [0, 0], sizes = [64, 32], strides = [1, 1]} : vector<64x64xf32> to vector<64x32xf32>
    %45 = vector.extract_strided_slice %43 {offsets = [0, 32], sizes = [64, 32], strides = [1, 1]} : vector<64x64xf32> to vector<64x32xf32>
    %c112 = arith.constant 112 : index
    %c0_16 = arith.constant 0 : index
    %46 = vector.load %arg2[%c112, %c0_16] : memref<320x128xbf16, #tpu.memory_space<vmem>>, vector<32x32xbf16>
    %47 = arith.truncf %44 : vector<64x32xf32> to vector<64x32xbf16>
    %cst_17 = arith.constant dense<0.000000e+00> : vector<64x32xf32>
    %48 = tpu.matmul %47, %46, %cst_17 {dimension_numbers = #tpu.dot_dimension_numbers<[1], [0], [0], [1], [0, 0, 1, 1], [], []>} : vector<64x32xbf16>, vector<32x32xbf16>, vector<64x32xf32> -> vector<64x32xf32>
    %c3 = arith.constant 3 : index
    %c0_18 = arith.constant 0 : index
    %49 = vector.load %arg3[%c3, %c0_18] : memref<16x128xf32, #tpu.memory_space<vmem>>, vector<1x32xf32>
    %50 = vector.broadcast %49 : vector<1x32xf32> to vector<64x32xf32>
    %51 = arith.addf %48, %50 : vector<64x32xf32>
    %c176 = arith.constant 176 : index
    %c0_19 = arith.constant 0 : index
    %52 = vector.load %arg2[%c176, %c0_19] : memref<320x128xbf16, #tpu.memory_space<vmem>>, vector<32x32xbf16>
    %53 = arith.truncf %45 : vector<64x32xf32> to vector<64x32xbf16>
    %cst_20 = arith.constant dense<0.000000e+00> : vector<64x32xf32>
    %54 = tpu.matmul %53, %52, %cst_20 {dimension_numbers = #tpu.dot_dimension_numbers<[1], [0], [0], [1], [0, 0, 1, 1], [], []>} : vector<64x32xbf16>, vector<32x32xbf16>, vector<64x32xf32> -> vector<64x32xf32>
    %c4 = arith.constant 4 : index
    %c0_21 = arith.constant 0 : index
    %55 = vector.load %arg3[%c4, %c0_21] : memref<16x128xf32, #tpu.memory_space<vmem>>, vector<1x32xf32>
    %56 = vector.broadcast %55 : vector<1x32xf32> to vector<64x32xf32>
    %57 = arith.addf %54, %56 : vector<64x32xf32>
    %58 = math.tanh %57 : vector<64x32xf32>
    %c6 = arith.constant 6 : index
    %c0_22 = arith.constant 0 : index
    %59 = vector.load %arg3[%c6, %c0_22] : memref<16x128xf32, #tpu.memory_space<vmem>>, vector<1x32xf32>
    %60 = vector.broadcast %59 : vector<1x32xf32> to vector<64x32xf32>
    %61 = arith.mulf %58, %60 : vector<64x32xf32>
    %cst_23 = arith.constant dense<0.000000e+00> : vector<64xf32>
    %62 = vector.multi_reduction <add>, %61, %cst_23 [1] : vector<64x32xf32> to vector<64xf32>
    %63 = vector.shape_cast %62 : vector<64xf32> to vector<64x1xf32>
    %c5 = arith.constant 5 : index
    %c0_24 = arith.constant 0 : index
    %64 = vector.load %arg3[%c5, %c0_24] : memref<16x128xf32, #tpu.memory_space<vmem>>, vector<1x1xf32>
    %65 = vector.broadcast %64 : vector<1x1xf32> to vector<64x1xf32>
    %66 = arith.addf %63, %65 : vector<64x1xf32>
    %67 = vector.shape_cast %66 : vector<64x1xf32> to vector<8x8x1xf32>
    %68 = math.exp %67 : vector<8x8x1xf32>
    %cst_25 = arith.constant 0.000000e+00 : f32
    %69 = vector.broadcast %cst_25 : f32 to vector<8x8x1xf32>
    %70 = arith.cmpf one, %67, %69 : vector<8x8x1xf32>
    %71 = arith.extui %70 : vector<8x8x1xi1> to vector<8x8x1xi32>
    %72 = arith.sitofp %71 : vector<8x8x1xi32> to vector<8x8x1xf32>
    %73 = arith.mulf %68, %72 : vector<8x8x1xf32>
    %74 = arith.mulf %73, %22 : vector<8x8x1xf32>
    %75 = vector.shape_cast %51 : vector<64x32xf32> to vector<8x8x32xf32>
    %cst_26 = arith.constant dense<0.000000e+00> : vector<8x1xf32>
    %76 = vector.multi_reduction <add>, %74, %cst_26 [1] : vector<8x8x1xf32> to vector<8x1xf32>
    %77 = tpu.reciprocal %76 {approx = true} : vector<8x1xf32> -> vector<8x1xf32>
    %78 = vector.broadcast %74 : vector<8x8x1xf32> to vector<8x8x32xf32>
    %79 = arith.mulf %78, %75 : vector<8x8x32xf32>
    %cst_27 = arith.constant dense<0.000000e+00> : vector<8x32xf32>
    %80 = vector.multi_reduction <add>, %79, %cst_27 [1] : vector<8x8x32xf32> to vector<8x32xf32>
    %81 = vector.broadcast %77 : vector<8x1xf32> to vector<8x32xf32>
    %82 = arith.mulf %80, %81 : vector<8x32xf32>
    %c208 = arith.constant 208 : index
    %c0_28 = arith.constant 0 : index
    %83 = vector.load %arg2[%c208, %c0_28] : memref<320x128xbf16, #tpu.memory_space<vmem>>, vector<6x64xbf16>
    %84 = arith.truncf %2 : vector<8x6xf32> to vector<8x6xbf16>
    %cst_29 = arith.constant dense<0.000000e+00> : vector<8x64xf32>
    %85 = tpu.matmul %84, %83, %cst_29 {dimension_numbers = #tpu.dot_dimension_numbers<[1], [0], [0], [1], [0, 0, 1, 1], [], []>} : vector<8x6xbf16>, vector<6x64xbf16>, vector<8x64xf32> -> vector<8x64xf32>
    %c224 = arith.constant 224 : index
    %c0_30 = arith.constant 0 : index
    %86 = vector.load %arg2[%c224, %c0_30] : memref<320x128xbf16, #tpu.memory_space<vmem>>, vector<32x64xbf16>
    %87 = arith.truncf %82 : vector<8x32xf32> to vector<8x32xbf16>
    %cst_31 = arith.constant dense<0.000000e+00> : vector<8x64xf32>
    %88 = tpu.matmul %87, %86, %cst_31 {dimension_numbers = #tpu.dot_dimension_numbers<[1], [0], [0], [1], [0, 0, 1, 1], [], []>} : vector<8x32xbf16>, vector<32x64xbf16>, vector<8x64xf32> -> vector<8x64xf32>
    %89 = arith.addf %85, %88 : vector<8x64xf32>
    %c7 = arith.constant 7 : index
    %c0_32 = arith.constant 0 : index
    %90 = vector.load %arg3[%c7, %c0_32] : memref<16x128xf32, #tpu.memory_space<vmem>>, vector<1x64xf32>
    %91 = vector.broadcast %90 : vector<1x64xf32> to vector<8x64xf32>
    %92 = arith.addf %89, %91 : vector<8x64xf32>
    %93 = math.tanh %92 : vector<8x64xf32>
    %c256 = arith.constant 256 : index
    %c0_33 = arith.constant 0 : index
    %94 = vector.load %arg2[%c256, %c0_33] : memref<320x128xbf16, #tpu.memory_space<vmem>>, vector<64x128xbf16>
    %95 = arith.truncf %93 : vector<8x64xf32> to vector<8x64xbf16>
    %cst_34 = arith.constant dense<0.000000e+00> : vector<8x128xf32>
    %96 = tpu.matmul %95, %94, %cst_34 {dimension_numbers = #tpu.dot_dimension_numbers<[1], [0], [0], [1], [0, 0, 1, 1], [], []>} : vector<8x64xbf16>, vector<64x128xbf16>, vector<8x128xf32> -> vector<8x128xf32>
    %c8 = arith.constant 8 : index
    %c0_35 = arith.constant 0 : index
    %97 = vector.load %arg3[%c8, %c0_35] : memref<16x128xf32, #tpu.memory_space<vmem>>, vector<1x128xf32>
    %98 = vector.broadcast %97 : vector<1x128xf32> to vector<8x128xf32>
    %99 = arith.addf %96, %98 : vector<8x128xf32>
    %100 = arith.truncf %99 : vector<8x128xf32> to vector<8x128xbf16>
    %c0_36 = arith.constant 0 : index
    %c0_37 = arith.constant 0 : index
    %101 = vector.load %arg4[%c0_36, %c0_37] : memref<8x128xbf16, #tpu.memory_space<vmem>>, vector<8x128xbf16>
    tpu.vector_store %arg4[%c0_36, %c0_37], %100 {strides = array<i32>} : memref<8x128xbf16, #tpu.memory_space<vmem>>, vector<8x128xbf16>,
    return
  }
  func.func @transform_0(%arg0: i32) -> (i32, i32, i32) {
    %c0_i32 = arith.constant 0 : i32
    %c0_i32_0 = arith.constant 0 : i32
    %c0_i32_1 = arith.constant 0 : i32
    return %arg0, %c0_i32, %c0_i32_0 : i32, i32, i32
  }
  func.func @transform_1(%arg0: i32) -> (i32, i32) {
    %c0_i32 = arith.constant 0 : i32
    %c0_i32_0 = arith.constant 0 : i32
    %c0_i32_1 = arith.constant 0 : i32
    return %c0_i32, %c0_i32_0 : i32, i32
  }
  func.func @transform_2(%arg0: i32) -> (i32, i32) {
    %c0_i32 = arith.constant 0 : i32
    %c0_i32_0 = arith.constant 0 : i32
    %c0_i32_1 = arith.constant 0 : i32
    return %c0_i32, %c0_i32_0 : i32, i32
  }
  func.func @transform_3(%arg0: i32) -> (i32, i32) {
    %c0_i32 = arith.constant 0 : i32
    %c0_i32_0 = arith.constant 0 : i32
    return %arg0, %c0_i32 : i32, i32
  }
}

</mosaic_0001>

<bundles_post_ra>
// kernel: tpu_custom_call.1
= control target key start
LH: loop header
LB: loop body
LE: loop exit
PB: predicated region body
PF: predicated region fallthrough
CT: control target
= control target key end

     0   :  { %8 = vsyncpa [#allocation3], 0  ;;  %s2223_s0 = inlined_call_operand.hbm [shape: f32[8,8,13], index: 0, kind: input, shape index: {}]   ;;  %s2224_s1 = inlined_call_operand.hbm [shape: bf16[320,128], index: 1, kind: input, shape index: {}]   ;;  %s2225_s2 = inlined_call_operand.hbm [shape: f32[16,128], index: 2, kind: input, shape index: {}]   ;;  %s2226_s3 = inlined_call_operand.hbm [shape: bf16[8,128], index: 3, kind: output, shape index: {}]  }
   0x1   :  { %9 = vsyncpa [#allocation6], 0 }
   0x2   :  { %10 = vsyncpa [#allocation4], 0  ;;  %s1943_s12 = smov [#allocation5]   ;;  %s1849_s16 = scalar_lea.hbm %s2224_s1, 2560 }
   0x3   :  { %s28_s13 = sshll.u32 %s1943_s12, 4  ;;  %p1850_p0 = scmp.ne.s32.totalorder %s2224_s1, %s1849_s16  ;;  %s29_s13 = int_to_ptr.vmem [resolvable:$true] %s28_s13 }
   0x4   :  { %p1853_p1 = scmp.lt.u32.totalorder %s1849_s16, %s2224_s1 }
   0x6   :  { %p1855_p2 = pnand %p1853_p1, %p1850_p0 }
   0x8   :  { %1858 = shalt.err (!%p1855_p2)
}
   0x9   :  { %s1859_s21 = scalar_lea.vmem %s29_s13, 2560  ;;  %p1864_p4 = scmp.lt.s32.totalorder %s29_s13, %s29_s13 }
   0xa   :  { %p1860_p3 = scmp.ne.s32.totalorder %s29_s13, %s1859_s21  ;;  %p1865_p5 = scmp.lt.s32.totalorder %s1859_s21, %s1859_s21 }
   0xc   :  { %p1866_p6 = por %p1865_p5, %p1864_p4 }
   0xe   :  { %p1867_p7 = pnand %p1866_p6, %p1860_p3 }
  0x10   :  { %1870 = shalt.err (!%p1867_p7)
}
  0x11   :  { %s1944_s22 = smov 64   ;;  %s1945_s23 = smov 4  }
  0x12   :  { %34 = dma.hbm_to_vmem [thread:$0]  %s2224_s1, 2560, %s29_s13, [#allocation6], %s1944_s22, %s1944_s22, %s1945_s23  }
  0x13   :  { %s1946_s26 = smov [#allocation2]   ;;  %s1871_s30 = scalar_lea.hbm %s2223_s0, 1024 }
  0x14   :  { %s16_s27 = sshll.u32 %s1946_s26, 4  ;;  %p1872_p8 = scmp.ne.s32.totalorder %s2223_s0, %s1871_s30  ;;  %s17_s27 = int_to_ptr.vmem [resolvable:$true] %s16_s27 }
  0x15   :  { %p1875_p9 = scmp.lt.u32.totalorder %s1871_s30, %s2223_s0 }
  0x17   :  { %p1877_p10 = pnand %p1875_p9, %p1872_p8 }
  0x19   :  { %1880 = shalt.err (!%p1877_p10)
}
  0x1a   :  { %s1881_s8 = scalar_lea.vmem %s17_s27, 1024  ;;  %p1886_p12 = scmp.lt.s32.totalorder %s17_s27, %s17_s27 }
  0x1b   :  { %p1882_p11 = scmp.ne.s32.totalorder %s17_s27, %s1881_s8  ;;  %p1887_p13 = scmp.lt.s32.totalorder %s1881_s8, %s1881_s8 }
  0x1d   :  { %p1888_p0 = por %p1887_p13, %p1886_p12 }
  0x1f   :  { %p1889_p1 = pnand %p1888_p0, %p1882_p11 }
  0x21   :  { %1892 = shalt.err (!%p1889_p1)
}
  0x22   :  { %s1947_s1 = smov 128   ;;  %s1948_s9 = smov 8  }
  0x23   :  { %22 = dma.hbm_to_vmem [thread:$0]  %s2223_s0, 1024, %s17_s27, [#allocation3], %s1947_s1, %s1947_s1, %s1948_s9  }
  0x24   :  { %s1949_s12 = smov [#allocation7]   ;;  %s1893_s16 = scalar_lea.hbm %s2225_s2, 256 }
  0x25   :  { %s40_s13 = sshll.u32 %s1949_s12, 4  ;;  %p1894_p2 = scmp.ne.s32.totalorder %s2225_s2, %s1893_s16  ;;  %s41_s13 = int_to_ptr.vmem [resolvable:$true] %s40_s13 }
  0x26   :  { %p1897_p3 = scmp.lt.u32.totalorder %s1893_s16, %s2225_s2 }
  0x28   :  { %p1899_p4 = pnand %p1897_p3, %p1894_p2 }
  0x2a   :  { %1902 = shalt.err (!%p1899_p4)
}
  0x2b   :  { %s1903_s21 = scalar_lea.vmem %s41_s13, 256  ;;  %p1908_p6 = scmp.lt.s32.totalorder %s41_s13, %s41_s13 }
  0x2c   :  { %p1904_p5 = scmp.ne.s32.totalorder %s41_s13, %s1903_s21  ;;  %p1909_p7 = scmp.lt.s32.totalorder %s1903_s21, %s1903_s21 }
  0x2e   :  { %p1910_p8 = por %p1909_p7, %p1908_p6 }
  0x30   :  { %p1911_p9 = pnand %p1910_p8, %p1904_p5 }
  0x32   :  { %1914 = shalt.err (!%p1911_p9)
}
  0x33   :  { %46 = dma.hbm_to_vmem [thread:$0]  %s2225_s2, 256, %s41_s13, [#allocation6], %s1947_s1, %s1947_s1, %s1948_s9  }
  0x34   :  { %1937 = dma.done.wait [#allocation3], 1024  }
  0x35   :  { %1938 = vsyncadd [#allocation3], 4294966272 }
  0x36   :  { %1939 = dma.done.wait [#allocation6], 2816  }
  0x37   :  { %1940 = vsyncadd [#allocation6], 4294964480  ;;  %vm94_vm0 = vcmask 1045504   ;;  %vm95_vm1 = vcmask 1046528   ;;  %v1950_v0 = vmov 65535   ;;  %v57_v4 = vld [vmem:[#allocation2] sm:$0xff] }
  0x38   :  { %v96_v1 = vsel %vm94_vm0, 4294967295, %v1950_v0  ;;  %v1730_v3 = vld [vmem:[#allocation5] sm:$0x7f]   ;;  %v58_v5 = vld [vmem:[#allocation2 + $0x8] sm:$0xff]  ;;  %vm81_vm2 = vcmask 105472   ;;  %v59_v6 = vld [vmem:[#allocation2 + $0x10] sm:$0xff]  ;;  %v1229_v9 = vpack.c.bf16 %v57_v4, %v57_v4 }
  0x39   :  { %v97_v2 = vsel %vm95_vm1, %v96_v1, 0  ;;  %v67_v8 = vpack.c.bf16 %v58_v5, %v57_v4  ;;  %v1230_v10 = vpack.c.bf16 %v58_v5, %v58_v5  ;;  %v60_v11 = vld [vmem:[#allocation2 + $0x18] sm:$0xff]  ;;  %v61_v12 = vld [vmem:[#allocation2 + $0x20] sm:$0xff]  ;;  %v62_v13 = vld [vmem:[#allocation2 + $0x28] sm:$0xff]  ;;  %vm407_vm3 = vcmask 1041409   ;;  %s1954_s2 = smov 96  }
  0x3a   :  { %v99_v7 = vand.u32 %v1730_v3, %v97_v2  ;;  %v68_v14 = vpack.c.bf16 %v60_v11, %v59_v6  ;;  %v1231_v15 = vpack.c.bf16 %v59_v6, %v59_v6  ;;  %v1232_v16 = vpack.c.bf16 %v60_v11, %v60_v11  ;;  %v63_v29 = vld [vmem:[#allocation2 + $0x30] sm:$0xff]  ;;  %v64_v34 = vld [vmem:[#allocation2 + $0x38] sm:$0xff]  ;;  %v1731_v39 = vld [vmem:[#allocation5 + $0x8] sm:$0xff]   ;;  %s1956_s23 = smov [#allocation8]  }
  0x3b   :  { %1620 = vmatprep.mubr.msk.bf16.mxu0 %vm81_vm2, %v67_v8  ;;  %v1336_v17 = vunpack.c.l.b16 %v1229_v9  ;;  %v1337_v18 = vunpack.c.l.b16 %v1230_v10  ;;  %v1233_v19 = vpack.c.bf16 %v61_v12, %v61_v12  ;;  %v1234_v20 = vpack.c.bf16 %v62_v13, %v62_v13  ;;  %1628 = vmatprep.subr.bf16.mxu1 %v1731_v39  ;;  %v1732_v40 = vld [vmem:[#allocation5 + $0x10] sm:$0xff]   ;;  %v1733_v41 = vld [vmem:[#allocation5 + $0x18] sm:$0xff]   ;;  %v1734_v42 = vld [vmem:[#allocation5 + $0x20] sm:$0xff]   ;;  %s1503_s24 = sshll.u32 %s1956_s23, 4  ;;  %s1504_s24 = int_to_ptr.vmem [resolvable:$true] %s1503_s24 }
  0x3c   :  { %1618 = vmatprep.subr.bf16.mxu0 %v99_v7  ;;  %v1338_v21 = vunpack.c.l.b16 %v1231_v15  ;;  %v1339_v22 = vunpack.c.l.b16 %v1232_v16  ;;  %v69_v23 = vpack.c.bf16 %v62_v13, %v61_v12  ;;  %vm409_vm4 = vcmask 1042434   ;;  %1629 = vmatpush3.bf16.msra.mxu1 %v1731_v39  ;;  %v1513_v43 = vld [vmem:[#allocation7] ss:$0 sm:$0xff]  ;;  %v1735_v9 = vld [vmem:[#allocation5 + $0x48] sm:$0xff]   ;;  %v1736_v10 = vld [vmem:[#allocation5 + $0x50] sm:$0xff]   ;;  %s1915_s25 = scalar_lea.vmem %s1504_s24, 64  ;;  %p1920_p11 = scmp.lt.s32.totalorder %s1504_s24, %s1504_s24 }
  0x3d   :  { %1619 = vmatpush3.bf16.msra.mxu0 %v99_v7  ;;  %v1344_v24 = vrot.slane %v1337_v18, 7  ;;  %v1340_v25 = vunpack.c.l.b16 %v1233_v19  ;;  %v1341_v26 = vunpack.c.l.b16 %v1234_v20  ;;  %vm411_vm5 = vcmask 1043459   ;;  %1630 = vmatprep.subr.bf16.mxu1 %v1732_v40  ;;  %v2032_v11 = vld [vmem:[#allocation5 + $0x28] sm:$0xff]   ;;  %v1519_v12 = vld [vmem:[#allocation7 + $0x1] ss:$0 sm:$0xff]  ;;  %p1916_p10 = scmp.ne.s32.totalorder %s1504_s24, %s1915_s25  ;;  %p1921_p12 = scmp.lt.s32.totalorder %s1915_s25, %s1915_s25 }
  0x3e   :  { %v1346_v27 = vrot.slane %v1338_v21, 6  ;;  %v1348_v28 = vrot.slane %v1339_v22, 5  ;;  %vm413_vm6 = vcmask 1044484   ;;  %vm415_vm7 = vcmask 1045509  }
  0x3f   :  { %v1345_v30 = vsel %vm407_vm3, %v1344_v24, %v1336_v17  ;;  %v1350_v31 = vrot.slane %v1340_v25, 4  ;;  %v1352_v32 = vrot.slane %v1341_v26, 3  ;;  %v70_v38 = vpack.c.bf16 %v64_v34, %v63_v29  ;;  %p1922_p13 = por %p1921_p12, %p1920_p11 }
  0x40   :  { %1621 = vmatmul.mubr.msk.bf16.vlgmr.msra.gmra.mrb[0].mxu0 %vm81_vm2, %v68_v14  ;;  %v1347_v33 = vsel %vm409_vm4, %v1346_v27, %v1345_v30  ;;  %1631 = vmatpush3.bf16.msra.mxu1 %v1732_v40  ;;  %vm215_vm8 = vcmask 523264   ;;  %v1951_v8 = vmov 0.0   ;;  %vm1952_vm9 = vmmov 0  }
  0x41   :  { %1624 = vmatprep.mubr.msk.bf16.mxu0 %vm81_vm2, %v69_v23  ;;  %v1349_v35 = vsel %vm411_vm5, %v1348_v28, %v1347_v33  ;;  %1632 = vmatprep.subr.bf16.mxu1 %v1733_v41  ;;  %v301_v14 = vlaneseq  ;;  %vm314_vm11 = vcmask 261120   ;;  %vm417_vm12 = vcmask 1046534   ;;  %p1923_p0 = pnand %p1922_p13, %p1916_p10 }
  0x42   :  { %v1351_v36 = vsel %vm413_vm6, %v1350_v31, %v1349_v35  ;;  %1644 = vmatprep.subr.bf16.mxu0 %v1951_v8  ;;  %vm419_vm13 = vcmask 1047559   ;;  %vm1011_vm1 = vcmask 7168  }
  0x43   :  { %v2021_v37 = vsel %vm415_vm7, %v1352_v32, %v1351_v36  ;;  %1645 = vmatpush3.bf16.msra.mxu0 %v1735_v9  ;;  %v2035_v21 = vshrl.u32 %v301_v14, 7 }
  0x44   :  { %1633 = vmatpush3.bf16.msra.mxu1 %v1733_v41  ;;  %1646 = vmatprep.subr.bf16.mxu0 %v1951_v8 }
  0x45   :  { %1634 = vmatprep.subr.bf16.mxu1 %v1734_v42  ;;  %vm303_vm10 = vcmp.lt.s32.totalorder %v2035_v21, 5 }
  0x46   :  { %v2039_v28 = vsel %vm303_vm10, 1.0, %v1951_v8 }
  0x47   :  { %1647 = vmatpush3.bf16.msra.mxu0 %v1736_v10 }
  0x48   :  { %1625 = vmatmul.mubr.msk.bf16.gmra.mrb[4].mxu0 %vm81_vm2, %v70_v38  ;;  %1635 = vmatpush3.bf16.msra.mxu1 %v1734_v42 }
  0x49   :  { %1648 = vmatprep.mubr.msk.bf16.mxu0 %vm1952_vm9, %v1951_v8  ;;  %1652 = vmatprep.subr.bf16.mxu0 %v2032_v11 }
 0x113   :  { %v1622_v44 = vpop.f32.mrb[0].mxu0 }
 0x114   :  { %v144_v45 = vadd.f32 %v1622_v44, %v1513_v43  ;;  %v135_v46 = vpop.f32.mrb[1].mxu0 }
 0x115   :  { %v136_v47 = vadd.f32 %v1513_v43, %v135_v46  ;;  %v1623_v48 = vpop.f32.mrb[2].mxu0 }
 0x116   :  { %1749 = vtanh.f32 %v144_v45  ;;  %v147_v49 = vadd.f32 %v1623_v48, %v1513_v43  ;;  %v138_v50 = vpop.f32.mrb[3].mxu0 }
 0x117   :  { %1751 = vtanh.f32 %v136_v47  ;;  %v139_v51 = vadd.f32 %v1513_v43, %v138_v50 }
 0x118   :  { %1753 = vtanh.f32 %v147_v49 }
 0x119   :  { %1755 = vtanh.f32 %v139_v51 }
 0x11b   :  { %v1626_v52 = vpop.f32.mrb[4].mxu0 }
 0x11c   :  { %v160_v53 = vadd.f32 %v1626_v52, %v1513_v43  ;;  %v151_v54 = vpop.f32.mrb[5].mxu0 }
 0x11d   :  { %v152_v55 = vadd.f32 %v1513_v43, %v151_v54  ;;  %v1627_v56 = vpop.f32.mrb[6].mxu0 }
 0x11e   :  { %1757 = vtanh.f32 %v160_v53  ;;  %v163_v57 = vadd.f32 %v1627_v56, %v1513_v43  ;;  %v154_v58 = vpop.f32.mrb[7].mxu0 }
 0x11f   :  { %1759 = vtanh.f32 %v152_v55  ;;  %v155_v59 = vadd.f32 %v1513_v43, %v154_v58 }
 0x120   :  { %v1750_v60 = vpop.eup %1749  ;;  %1761 = vtanh.f32 %v163_v57 }
 0x121   :  { %v1752_v61 = vpop.eup %1751  ;;  %1763 = vtanh.f32 %v155_v59 }
 0x122   :  { %v1754_v62 = vpop.eup %1753 }
 0x123   :  { %v1756_v63 = vpop.eup %1755  ;;  %v183_v0 = vpack.c.bf16 %v1754_v62, %v1750_v60 }
 0x124   :  { %v182_v1 = vpack.c.bf16 %v1756_v63, %v1752_v61 }
 0x126   :  { %1636 = vmatprep.mubr.msk.bf16.mxu1 %vm215_vm8, %v182_v1 }
 0x127   :  { %1637 = vmatmul.mubr.msk.bf16.vlgmr.msra.gmra.mrb[0].mxu1 %vm215_vm8, %v183_v0 }
 0x128   :  { %v1758_v2 = vpop.eup %1757 }
 0x129   :  { %v1760_v3 = vpop.eup %1759 }
 0x12a   :  { %v1762_v4 = vpop.eup %1761 }
 0x12b   :  { %v1764_v5 = vpop.eup %1763  ;;  %v185_v6 = vpack.c.bf16 %v1762_v4, %v1758_v2 }
 0x12c   :  { %v184_v7 = vpack.c.bf16 %v1764_v5, %v1760_v3 }
 0x12e   :  { %1640 = vmatprep.mubr.msk.bf16.mxu1 %vm215_vm8, %v184_v7 }
 0x12f   :  { %1641 = vmatmul.mubr.msk.bf16.gmra.mrb[4].mxu1 %vm215_vm8, %v185_v6 }
 0x1fa   :  { %v1638_v13 = vpop.f32.mrb[0].mxu1 }
 0x1fb   :  { %v271_v15 = vadd.f32 %v1638_v13, %v1519_v12  ;;  %v262_v16 = vpop.f32.mrb[1].mxu1 }
 0x1fc   :  { %v263_v17 = vadd.f32 %v1519_v12, %v262_v16  ;;  %v1639_v18 = vpop.f32.mrb[2].mxu1 }
 0x1fd   :  { %1765 = vtanh.f32 %v271_v15  ;;  %v274_v19 = vadd.f32 %v1639_v18, %v1519_v12  ;;  %v265_v20 = vpop.f32.mrb[3].mxu1 }
 0x1fe   :  { %1767 = vtanh.f32 %v263_v17  ;;  %v266_v22 = vadd.f32 %v1519_v12, %v265_v20 }
 0x1ff   :  { %1769 = vtanh.f32 %v274_v19 }
 0x200   :  { %1771 = vtanh.f32 %v266_v22 }
 0x202   :  { %v1642_v23 = vpop.f32.mrb[4].mxu1 }
 0x203   :  { %v287_v24 = vadd.f32 %v1642_v23, %v1519_v12  ;;  %v278_v25 = vpop.f32.mrb[5].mxu1 }
 0x204   :  { %v279_v26 = vadd.f32 %v1519_v12, %v278_v25  ;;  %v1643_v27 = vpop.f32.mrb[6].mxu1 }
 0x205   :  { %1773 = vtanh.f32 %v287_v24  ;;  %v290_v29 = vadd.f32 %v1643_v27, %v1519_v12  ;;  %v281_v30 = vpop.f32.mrb[7].mxu1 }
 0x206   :  { %1775 = vtanh.f32 %v279_v26  ;;  %v282_v31 = vadd.f32 %v1519_v12, %v281_v30 }
 0x207   :  { %v2041_v32 = vpop.eup %1765  ;;  %1777 = vtanh.f32 %v290_v29 }
 0x208   :  { %v2043_v33 = vpop.eup %1767  ;;  %v308_v34 = vmul.f32 %v2041_v32, %v2039_v28  ;;  %1779 = vtanh.f32 %v282_v31 }
 0x209   :  { %v2047_v35 = vpop.eup %1769  ;;  %v306_v36 = vmul.f32 %v2043_v33, %v2039_v28 }
 0x20a   :  { %v2051_v38 = vpop.eup %1771  ;;  %v329_v39 = vsel %vm314_vm11, %v308_v34, 0.0  ;;  %v309_v40 = vmul.f32 %v2047_v35, %v2039_v28  ;;  %v572_v41 = vpack.c.bf16 %v2047_v35, %v2041_v32  ;;  %v1953_v32 = vmov 1966171168  }
 0x20b   :  { %v330_v42 = vrot.slane %v329_v39, 4  ;;  %v315_v43 = vsel %vm314_vm11, %v306_v36, 0.0  ;;  %v307_v44 = vmul.f32 %v2051_v38, %v2039_v28  ;;  %v571_v45 = vpack.c.bf16 %v2051_v38, %v2043_v33  ;;  %v1742_v33 = vld [vmem:[#allocation5 + $0x60] sm:$0xff]  }
 0x20c   :  { %v316_v46 = vrot.slane %v315_v43, 4  ;;  %v336_v47 = vsel %vm314_vm11, %v309_v40, 0.0  ;;  %v480_v35 = vunpack.c.l.s4 %v1953_v32 }
 0x20d   :  { %v331_v48 = vadd.f32 %v330_v42, %v329_v39  ;;  %v337_v49 = vrot.slane %v336_v47, 4  ;;  %v322_v50 = vsel %vm314_vm11, %v307_v44, 0.0 }
 0x20e   :  { %v317_v51 = vadd.f32 %v316_v46, %v315_v43  ;;  %v323_v52 = vrot.slane %v322_v50, 4  ;;  %v481_v38 = vunpack.c.0.s8 %v480_v35 }
 0x20f   :  { %v2065_v53 = vpop.eup %1773  ;;  %v332_v54 = vrot.slane %v331_v48, 2  ;;  %v338_v55 = vadd.f32 %v337_v49, %v336_v47 }
 0x210   :  { %v2067_v56 = vpop.eup %1775  ;;  %v318_v57 = vrot.slane %v317_v51, 2  ;;  %v324_v58 = vadd.f32 %v323_v52, %v322_v50  ;;  %v312_v59 = vmul.f32 %v2065_v53, %v2039_v28 }
 0x211   :  { %v2071_v60 = vpop.eup %1777  ;;  %v333_v61 = vadd.f32 %v332_v54, %v331_v48  ;;  %v339_v62 = vrot.slane %v338_v55, 2  ;;  %v310_v63 = vmul.f32 %v2067_v56, %v2039_v28 }
 0x212   :  { %v319_v0 = vadd.f32 %v318_v57, %v317_v51  ;;  %v325_v1 = vrot.slane %v324_v58, 2  ;;  %v357_v2 = vsel %vm314_vm11, %v312_v59, 0.0  ;;  %v313_v3 = vmul.f32 %v2071_v60, %v2039_v28  ;;  %v2078_v4 = vpop.eup %1779 }
 0x213   :  { %v334_v5 = vrot.slane %v333_v61, 1  ;;  %v340_v6 = vadd.f32 %v339_v62, %v338_v55  ;;  %v358_v7 = vrot.slane %v357_v2, 4  ;;  %v343_v9 = vsel %vm314_vm11, %v310_v63, 0.0 }
 0x214   :  { %v320_v10 = vrot.slane %v319_v0, 1  ;;  %v326_v12 = vadd.f32 %v325_v1, %v324_v58  ;;  %v344_v13 = vrot.slane %v343_v9, 4  ;;  %v364_v14 = vsel %vm314_vm11, %v313_v3, 0.0 }
 0x215   :  { %v335_v15 = vadd.f32 %v334_v5, %v333_v61  ;;  %v341_v16 = vrot.slane %v340_v6, 1  ;;  %v359_v17 = vadd.f32 %v358_v7, %v357_v2  ;;  %v365_v18 = vrot.slane %v364_v14, 4 }
 0x216   :  { %v321_v19 = vadd.f32 %v320_v10, %v319_v0  ;;  %v327_v20 = vrot.slane %v326_v12, 1  ;;  %v345_v22 = vadd.f32 %v344_v13, %v343_v9  ;;  %v311_v23 = vmul.f32 %v2078_v4, %v2039_v28 }
 0x217   :  { %v373_v24 = vmul.f32 0.2, %v335_v15  ;;  %v342_v25 = vadd.f32 %v341_v16, %v340_v6  ;;  %v360_v26 = vrot.slane %v359_v17, 2  ;;  %v366_v27 = vadd.f32 %v365_v18, %v364_v14 }
 0x218   :  { %v371_v29 = vmul.f32 0.2, %v321_v19  ;;  %v328_v30 = vadd.f32 %v327_v20, %v326_v12  ;;  %v346_v31 = vrot.slane %v345_v22, 2  ;;  %v350_v34 = vsel %vm314_vm11, %v311_v23, 0.0 }
 0x219   :  { %v374_v36 = vmul.f32 0.2, %v342_v25  ;;  %v361_v39 = vadd.f32 %v360_v26, %v359_v17  ;;  %v367_v40 = vrot.slane %v366_v27, 2  ;;  %v351_v46 = vrot.slane %v350_v34, 4 }
 0x21a   :  { %v383_v42 = vpack.c.bf16 %v371_v29, %v371_v29  ;;  %v372_v43 = vmul.f32 0.2, %v328_v30  ;;  %v347_v44 = vadd.f32 %v346_v31, %v345_v22  ;;  %v385_v47 = vpack.c.bf16 %v373_v24, %v373_v24  ;;  %v1739_v29 = vld [vmem:[#allocation5 + $0x38] sm:$0xff]   ;;  %v1740_v30 = vld [vmem:[#allocation5 + $0x40] sm:$0xff]  }
 0x21b   :  { %v386_v48 = vpack.c.bf16 %v374_v36, %v374_v36  ;;  %v362_v49 = vrot.slane %v361_v39, 1  ;;  %v368_v50 = vadd.f32 %v367_v40, %v366_v27  ;;  %v352_v54 = vadd.f32 %v351_v46, %v350_v34  ;;  %v1738_v27 = vld [vmem:[#allocation5 + $0x30] sm:$0xff]   ;;  %1664 = vmatprep.subr.bf16.mxu1 %v1739_v29 }
 0x21c   :  { %v384_v51 = vpack.c.bf16 %v372_v43, %v372_v43  ;;  %v348_v52 = vrot.slane %v347_v44, 1  ;;  %v399_v55 = vunpack.c.l.b16 %v383_v42  ;;  %v573_v58 = vpack.c.bf16 %v2078_v4, %v2067_v56  ;;  %1665 = vmatpush3.bf16.msra.mxu1 %v1739_v29 }
 0x21d   :  { %v369_v57 = vrot.slane %v368_v50, 1  ;;  %v353_v62 = vrot.slane %v352_v54, 2  ;;  %v574_v63 = vpack.c.bf16 %v2071_v60, %v2065_v53  ;;  %v401_v0 = vunpack.c.l.b16 %v385_v47  ;;  %1666 = vmatprep.subr.bf16.mxu1 %v1740_v30 }
 0x21e   :  { %v400_v59 = vunpack.c.l.b16 %v384_v51  ;;  %v349_v61 = vadd.f32 %v348_v52, %v347_v44  ;;  %v402_v1 = vunpack.c.l.b16 %v386_v48  ;;  %v363_v2 = vadd.f32 %v362_v49, %v361_v39 }
 0x21f   :  { %v370_v6 = vadd.f32 %v369_v57, %v368_v50  ;;  %v354_v7 = vadd.f32 %v353_v62, %v352_v54  ;;  %v529_v46 = vsub.s32 0, %v2035_v21 }
 0x220   :  { %v408_v3 = vsel %vm407_vm3, %v400_v59, %v399_v55  ;;  %v375_v5 = vmul.f32 0.2, %v349_v61  ;;  %v377_v4 = vmul.f32 0.2, %v363_v2  ;;  %1667 = vmatpush3.bf16.msra.mxu1 %v1740_v30  ;;  %v1538_v55 = vld [vmem:[#allocation7 + $0x2] ss:$0 sm:$0xff] }
 0x221   :  { %v410_v9 = vsel %vm409_vm4, %v401_v0, %v408_v3  ;;  %v355_v12 = vrot.slane %v354_v7, 1  ;;  %v378_v14 = vmul.f32 0.2, %v370_v6  ;;  %1688 = vmatprep.subr.bf16.mxu1 %v1951_v8 }
 0x222   :  { %v387_v10 = vpack.c.bf16 %v375_v5, %v375_v5  ;;  %v412_v56 = vsel %vm411_vm5, %v402_v1, %v410_v9  ;;  %v389_v60 = vpack.c.bf16 %v377_v4, %v377_v4 }
 0x223   :  { %v356_v15 = vadd.f32 %v355_v12, %v354_v7  ;;  %v390_v17 = vpack.c.bf16 %v378_v14, %v378_v14 }
 0x224   :  { %v403_v13 = vunpack.c.l.b16 %v387_v10  ;;  %v405_v20 = vunpack.c.l.b16 %v389_v60 }
 0x225   :  { %v376_v16 = vmul.f32 0.2, %v356_v15  ;;  %v406_v22 = vunpack.c.l.b16 %v390_v17 }
 0x226   :  { %v414_v53 = vsel %vm413_vm6, %v403_v13, %v412_v56 }
 0x227   :  { %v388_v18 = vpack.c.bf16 %v376_v16, %v376_v16 }
 0x229   :  { %v404_v19 = vunpack.c.l.b16 %v388_v18 }
 0x22b   :  { %v416_v23 = vsel %vm415_vm7, %v404_v19, %v414_v53 }
 0x22c   :  { %v418_v24 = vsel %vm417_vm12, %v405_v20, %v416_v23 }
 0x22d   :  { %v420_v25 = vsel %vm419_vm13, %v406_v22, %v418_v24 }
 0x22e   :  { %v421_v26 = vpack.c.b16 %v420_v25, %v420_v25 }
 0x230   :  { %1649 = vmatmul.mubr.msk.bf16.vlgmr.msra.gmra.mrb[8].mxu0 %vm314_vm11, %v421_v26 }
 0x231   :  { %1653 = vmatpush3.bf16.msra.mxu0 %v2032_v11  ;;  %1656 = vmatprep.mubr.msk.bf16.mxu0 %vm314_vm11, %v571_v45  ;;  %v1741_v11 = vld [vmem:[#allocation5 + $0x58] sm:$0xff]  }
 0x232   :  { %1654 = vmatprep.subr.bf16.mxu0 %v1738_v27 }
 0x235   :  { %1655 = vmatpush3.bf16.msra.mxu0 %v1738_v27 }
 0x236   :  { %1676 = vmatprep.subr.bf16.mxu0 %v1741_v11 }
 0x238   :  { %1657 = vmatmul.mubr.msk.bf16.vlgmr.msra.gmra.mrb[12].mxu0 %vm314_vm11, %v572_v41  ;;  %v484_v41 = vsub.s32 %v481_v38, %v2035_v21 }
 0x239   :  { %1660 = vmatprep.mubr.msk.bf16.mxu0 %vm314_vm11, %v573_v58  ;;  %1677 = vmatpush3.bf16.msra.mxu0 %v1741_v11 }
 0x23a   :  { %1678 = vmatprep.subr.bf16.mxu0 %v1742_v33 }
 0x23d   :  { %1679 = vmatpush3.bf16.msra.mxu0 %v1742_v33 }
 0x23e   :  { %1702 = vmatprep.subr.bf16.mxu0 %v1951_v8 }
 0x240   :  { %1661 = vmatmul.mubr.msk.bf16.gmra.mrb[16].mxu0 %vm314_vm11, %v574_v63 }
 0x303   :  { %v471_v45 = vpop.f32.mrb[8].mxu0 }
 0x304   :  { %v478_v31 = vcombine.high %v471_v45, %v471_v45  ;;  %v485_v34 = vrot.slane %v471_v45, %v484_v41  ;;  %v1650_v36 = vpop.f32.mrb[9].mxu0 }
 0x305   :  { %v474_v39 = vpop.f32.mrb[10].mxu0 }
 0x306   :  { %v492_v40 = vrot.slane %v478_v31, %v484_v41  ;;  %v493_v42 = vcombine.high %v485_v34, %v485_v34  ;;  %v501_v43 = vrot.slane %v485_v34, %v484_v41  ;;  %v1651_v44 = vpop.f32.mrb[11].mxu0 }
 0x308   :  { %v494_v47 = vcombine.high %v492_v40, %v492_v40  ;;  %v515_v48 = vrot.slane %v493_v42, %v484_v41  ;;  %v523_v49 = vcombine.high %v501_v43, %v501_v43  ;;  %v508_v50 = vrot.slane %v492_v40, %v484_v41 }
 0x309   :  { %v530_v57 = vrot.slane %v501_v43, %v529_v46 }
 0x30a   :  { %v538_v51 = vrot.slane %v523_v49, %v529_v46  ;;  %v525_v52 = vcombine.high %v515_v48, %v515_v48  ;;  %v522_v62 = vrot.slane %v494_v47, %v484_v41  ;;  %v534_v1 = vrot.slane %v515_v48, %v529_v46 }
 0x30b   :  { %v1658_v54 = vpop.f32.mrb[12].mxu0  ;;  %v524_v21 = vcombine.high %v508_v50, %v508_v50  ;;  %v546_v13 = vrot.slane %v508_v50, %v529_v46 }
 0x30c   :  { %v642_v58 = vadd.f32 %v1658_v54, %v538_v51  ;;  %v633_v59 = vpop.f32.mrb[13].mxu0  ;;  %v542_v61 = vrot.slane %v525_v52, %v529_v46  ;;  %v526_v10 = vcombine.high %v522_v62, %v522_v62  ;;  %v550_v17 = vrot.slane %v522_v62, %v529_v46  ;;  %v1546_v51 = vld [vmem:[#allocation7 + $0x4] ss:$0 sm:$0xff] }
 0x30d   :  { %v634_v63 = vadd.f32 %v633_v59, %v530_v57  ;;  %v1659_v0 = vpop.f32.mrb[14].mxu0  ;;  %v554_v56 = vrot.slane %v524_v21, %v529_v46 }
 0x30e   :  { %v671_v2 = vadd.f32 %v1538_v55, %v642_v58  ;;  %v645_v3 = vadd.f32 %v1659_v0, %v542_v61  ;;  %v636_v5 = vpop.f32.mrb[15].mxu0  ;;  %v558_v16 = vrot.slane %v526_v10, %v529_v46 }
 0x30f   :  { %v669_v6 = vadd.f32 %v1538_v55, %v634_v63  ;;  %v637_v7 = vadd.f32 %v636_v5, %v534_v1 }
 0x310   :  { %1781 = vtanh.f32 %v671_v2  ;;  %v672_v9 = vadd.f32 %v1538_v55, %v645_v3 }
 0x311   :  { %1783 = vtanh.f32 %v669_v6  ;;  %v670_v12 = vadd.f32 %v1538_v55, %v637_v7  ;;  %v1553_v6 = vld [vmem:[#allocation7 + $0x6] ss:$0 sm:$0xff] }
 0x312   :  { %1785 = vtanh.f32 %v672_v9 }
 0x313   :  { %1787 = vtanh.f32 %v670_v12  ;;  %v1662_v4 = vpop.f32.mrb[16].mxu0 }
 0x314   :  { %v658_v14 = vadd.f32 %v1662_v4, %v554_v56  ;;  %v649_v15 = vpop.f32.mrb[17].mxu0 }
 0x315   :  { %v650_v53 = vadd.f32 %v649_v15, %v546_v13  ;;  %v1663_v60 = vpop.f32.mrb[18].mxu0 }
 0x316   :  { %v675_v18 = vadd.f32 %v1538_v55, %v658_v14  ;;  %v661_v19 = vadd.f32 %v1663_v60, %v558_v16  ;;  %v652_v20 = vpop.f32.mrb[19].mxu0 }
 0x317   :  { %v673_v22 = vadd.f32 %v1538_v55, %v650_v53  ;;  %v653_v23 = vadd.f32 %v652_v20, %v550_v17 }
 0x318   :  { %1789 = vtanh.f32 %v675_v18  ;;  %v676_v24 = vadd.f32 %v1538_v55, %v661_v19 }
 0x319   :  { %1791 = vtanh.f32 %v673_v22  ;;  %v674_v25 = vadd.f32 %v1538_v55, %v653_v23 }
 0x31a   :  { %v1782_v26 = vpop.eup %1781  ;;  %1793 = vtanh.f32 %v676_v24 }
 0x31b   :  { %v1784_v27 = vpop.eup %1783  ;;  %1795 = vtanh.f32 %v674_v25 }
 0x31c   :  { %v1786_v29 = vpop.eup %1785 }
 0x31d   :  { %v1788_v30 = vpop.eup %1787  ;;  %v690_v11 = vpack.c.bf16 %v1786_v29, %v1782_v26 }
 0x31e   :  { %v689_v33 = vpack.c.bf16 %v1788_v30, %v1784_v27 }
 0x320   :  { %800 = vrot.lane.b32.xlu0 %v689_v33, %s1954_s2  ;;  %1668 = vmatprep.mubr.msk.bf16.mxu1 %vm314_vm11, %v689_v33  ;;  %v1955_v33 = vmov 0  }
 0x321   :  { %1669 = vmatmul.mubr.msk.bf16.vlgmr.msra.gmra.mrb[8].mxu1 %vm314_vm11, %v690_v11  ;;  %1729 = vset.pattern.permute.xlu0 %v1955_v33 }
 0x322   :  { %v1790_v32 = vpop.eup %1789  ;;  %1728 = vset.pattern.permute.xlu1 %v1955_v33 }
 0x323   :  { %v1792_v35 = vpop.eup %1791 }
 0x324   :  { %v1794_v38 = vpop.eup %1793  ;;  %802 = vrot.lane.b32.xlu0 %v690_v11, %s1954_s2 }
 0x325   :  { %v1796_v41 = vpop.eup %1795  ;;  %v692_v45 = vpack.c.bf16 %v1794_v38, %v1790_v32  ;;  %v1554_v32 = vld [vmem:[#allocation7 + $0x5] ss:$0 sm:$0xff] }
 0x326   :  { %v691_v31 = vpack.c.bf16 %v1796_v41, %v1792_v35 }
 0x328   :  { %804 = vrot.lane.b32.xlu1 %v691_v31, %s1954_s2  ;;  %1672 = vmatprep.mubr.msk.bf16.mxu1 %vm314_vm11, %v691_v31 }
 0x329   :  { %1673 = vmatmul.mubr.msk.bf16.gmra.mrb[12].mxu1 %vm314_vm11, %v692_v45 }
 0x32a   :  { %1692 = vmatprep.mubr.msk.bf16.mxu1 %vm1952_vm9, %v1951_v8 }
 0x32c   :  { %806 = vrot.lane.b32.xlu1 %v692_v45, %s1954_s2 }
 0x392   :  { %v801_v34 = vpop.permute.xlu0 %800 }
 0x393   :  { %1680 = vmatprep.mubr.msk.bf16.mxu0 %vm314_vm11, %v801_v34 }
 0x396   :  { %v803_v36 = vpop.permute.xlu0 %802 }
 0x397   :  { %1681 = vmatmul.mubr.msk.bf16.vlgmr.msra.gmra.mrb[20].mxu0 %vm314_vm11, %v803_v36 }
 0x39a   :  { %v805_v39 = vpop.permute.xlu1 %804 }
 0x39b   :  { %1684 = vmatprep.mubr.msk.bf16.mxu0 %vm314_vm11, %v805_v39 }
 0x39e   :  { %v807_v40 = vpop.permute.xlu1 %806 }
 0x39f   :  { %1685 = vmatmul.mubr.msk.bf16.gmra.mrb[24].mxu0 %vm314_vm11, %v807_v40 }
 0x3a0   :  { %1710 = vmatprep.mubr.msk.bf16.mxu0 %vm1952_vm9, %v1951_v8 }
 0x3f4   :  { %v2124_v42 = vpop.f32.mrb[8].mxu1 }
 0x3f5   :  { %v2126_v43 = vpop.f32.mrb[9].mxu1 }
 0x3f6   :  { %v2128_v44 = vpop.f32.mrb[10].mxu1 }
 0x3f7   :  { %v2130_v46 = vpop.f32.mrb[11].mxu1 }
 0x3fc   :  { %v2132_v47 = vpop.f32.mrb[12].mxu1 }
 0x3fd   :  { %v2134_v48 = vpop.f32.mrb[13].mxu1 }
 0x3fe   :  { %v2136_v49 = vpop.f32.mrb[14].mxu1 }
 0x3ff   :  { %v2138_v50 = vpop.f32.mrb[15].mxu1 }
 0x46a   :  { %v1682_v52 = vpop.f32.mrb[20].mxu0 }
 0x46b   :  { %v875_v54 = vadd.f32 %v1682_v52, %v1546_v51  ;;  %v866_v55 = vpop.f32.mrb[21].mxu0 }
 0x46c   :  { %v867_v57 = vadd.f32 %v1546_v51, %v866_v55  ;;  %v1683_v58 = vpop.f32.mrb[22].mxu0 }
 0x46d   :  { %1797 = vtanh.f32 %v875_v54  ;;  %v878_v59 = vadd.f32 %v1683_v58, %v1546_v51  ;;  %v869_v61 = vpop.f32.mrb[23].mxu0 }
 0x46e   :  { %1799 = vtanh.f32 %v867_v57  ;;  %v870_v62 = vadd.f32 %v1546_v51, %v869_v61 }
 0x470   :  { %1801 = vtanh.f32 %v870_v62 }
 0x471   :  { %1803 = vtanh.f32 %v878_v59 }
 0x472   :  { %v1686_v63 = vpop.f32.mrb[24].mxu0 }
 0x473   :  { %v891_v0 = vadd.f32 %v1686_v63, %v1546_v51  ;;  %v882_v1 = vpop.f32.mrb[25].mxu0 }
 0x474   :  { %v883_v2 = vadd.f32 %v1546_v51, %v882_v1  ;;  %v1687_v3 = vpop.f32.mrb[26].mxu0 }
 0x475   :  { %1805 = vtanh.f32 %v891_v0  ;;  %v894_v5 = vadd.f32 %v1687_v3, %v1546_v51  ;;  %v885_v21 = vpop.f32.mrb[27].mxu0 }
 0x476   :  { %1807 = vtanh.f32 %v883_v2  ;;  %v886_v7 = vadd.f32 %v1546_v51, %v885_v21 }
 0x477   :  { %v1798_v9 = vpop.eup %1797 }
 0x478   :  { %v1800_v10 = vpop.eup %1799  ;;  %1809 = vtanh.f32 %v886_v7  ;;  %v912_v12 = vmul.f32 %v1798_v9, %v1553_v6 }
 0x479   :  { %1811 = vtanh.f32 %v894_v5  ;;  %v910_v13 = vmul.f32 %v1800_v10, %v1553_v6 }
 0x47a   :  { %v1802_v56 = vpop.eup %1801  ;;  %v924_v4 = vsel %vm314_vm11, %v912_v12, 0.0 }
 0x47b   :  { %v1804_v14 = vpop.eup %1803  ;;  %925 = vadd.xlane.f32.xlu0 %v924_v4  ;;  %v911_v15 = vmul.f32 %v1802_v56, %v1553_v6  ;;  %v918_v53 = vsel %vm314_vm11, %v910_v13, 0.0 }
 0x47c   :  { %v913_v60 = vmul.f32 %v1804_v14, %v1553_v6 }
 0x47d   :  { %v921_v16 = vsel %vm314_vm11, %v911_v15, 0.0 }
 0x47e   :  { %922 = vadd.xlane.f32.xlu1 %v921_v16  ;;  %v927_v22 = vsel %vm314_vm11, %v913_v60, 0.0 }
 0x47f   :  { %v1806_v17 = vpop.eup %1805  ;;  %919 = vadd.xlane.f32.xlu0 %v918_v53 }
 0x480   :  { %v1808_v18 = vpop.eup %1807  ;;  %v916_v26 = vmul.f32 %v1806_v17, %v1553_v6 }
 0x481   :  { %v914_v19 = vmul.f32 %v1808_v18, %v1553_v6 }
 0x482   :  { %v1810_v20 = vpop.eup %1809  ;;  %v936_v30 = vsel %vm314_vm11, %v916_v26, 0.0 }
 0x483   :  { %v1812_v23 = vpop.eup %1811  ;;  %928 = vadd.xlane.f32.xlu0 %v927_v22  ;;  %v930_v24 = vsel %vm314_vm11, %v914_v19, 0.0  ;;  %v915_v25 = vmul.f32 %v1810_v20, %v1553_v6 }
 0x484   :  { %931 = vadd.xlane.f32.xlu1 %v930_v24  ;;  %v917_v29 = vmul.f32 %v1812_v23, %v1553_v6 }
 0x485   :  { %v933_v27 = vsel %vm314_vm11, %v915_v25, 0.0 }
 0x486   :  { %v939_v11 = vsel %vm314_vm11, %v917_v29, 0.0 }
 0x487   :  { %934 = vadd.xlane.f32.xlu0 %v933_v27 }
 0x488   :  { %937 = vadd.xlane.f32.xlu1 %v936_v30 }
 0x48b   :  { %940 = vadd.xlane.f32.xlu0 %v939_v11 }
 0x508   :  { %v926_v35 = vpop.xlane.xlu0 %925 }
 0x509   :  { %v949_v38 = vadd.f32 %v1554_v32, %v926_v35 }
 0x50b   :  { %v959_v41 = vmul.f32 1.442695, %v949_v38  ;;  %v923_v45 = vpop.xlane.xlu1 %922  ;;  %vm973_vm14 = vcmp.ne.f32.partialorder %v949_v38, 0.0 }
 0x50c   :  { %v948_v31 = vadd.f32 %v1554_v32, %v923_v45  ;;  %v920_v34 = vpop.xlane.xlu0 %919  ;;  %v1557_v1 = vsel %vm973_vm14, 1.0, %v1951_v8 }
 0x50d   :  { %1813 = vpow2.f32 %v959_v41  ;;  %v947_v36 = vadd.f32 %v1554_v32, %v920_v34 }
 0x50e   :  { %v957_v39 = vmul.f32 1.442695, %v948_v31  ;;  %vm972_vm15 = vcmp.ne.f32.partialorder %v948_v31, 0.0 }
 0x50f   :  { %v955_v40 = vmul.f32 1.442695, %v947_v36  ;;  %vm971_vm0 = vcmp.ne.f32.partialorder %v947_v36, 0.0  ;;  %v1556_v9 = vsel %vm972_vm15, 1.0, %v1951_v8 }
 0x510   :  { %1815 = vpow2.f32 %v957_v39  ;;  %v929_v51 = vpop.xlane.xlu0 %928  ;;  %v1555_v4 = vsel %vm971_vm0, 1.0, %v1951_v8 }
 0x511   :  { %1817 = vpow2.f32 %v955_v40  ;;  %v950_v52 = vadd.f32 %v1554_v32, %v929_v51  ;;  %v932_v54 = vpop.xlane.xlu1 %931 }
 0x512   :  { %v951_v55 = vadd.f32 %v1554_v32, %v932_v54 }
 0x513   :  { %v961_v57 = vmul.f32 1.442695, %v950_v52  ;;  %vm974_vm2 = vcmp.ne.f32.partialorder %v950_v52, 0.0 }
 0x514   :  { %v963_v58 = vmul.f32 1.442695, %v951_v55  ;;  %v935_v59 = vpop.xlane.xlu0 %934  ;;  %vm975_vm10 = vcmp.ne.f32.partialorder %v951_v55, 0.0  ;;  %v1558_v18 = vsel %vm974_vm2, 1.0, %v1951_v8 }
 0x515   :  { %1819 = vpow2.f32 %v961_v57  ;;  %v952_v61 = vadd.f32 %v1554_v32, %v935_v59  ;;  %v938_v62 = vpop.xlane.xlu1 %937  ;;  %v1559_v24 = vsel %vm975_vm10, 1.0, %v1951_v8 }
 0x516   :  { %1821 = vpow2.f32 %v963_v58  ;;  %v953_v63 = vadd.f32 %v1554_v32, %v938_v62 }
 0x517   :  { %v1814_v0 = vpop.eup %1813  ;;  %v965_v2 = vmul.f32 1.442695, %v952_v61  ;;  %vm976_vm14 = vcmp.ne.f32.partialorder %v952_v61, 0.0 }
 0x518   :  { %v997_v3 = vmul.f32 %v1814_v0, %v1557_v1  ;;  %v967_v5 = vmul.f32 1.442695, %v953_v63  ;;  %v941_v21 = vpop.xlane.xlu0 %940  ;;  %vm977_vm15 = vcmp.ne.f32.partialorder %v953_v63, 0.0  ;;  %v1560_v11 = vsel %vm976_vm14, 1.0, %v1951_v8 }
 0x519   :  { %1823 = vpow2.f32 %v965_v2  ;;  %v954_v6 = vadd.f32 %v1554_v32, %v941_v21  ;;  %v1561_v34 = vsel %vm977_vm15, 1.0, %v1951_v8 }
 0x51a   :  { %v1816_v7 = vpop.eup %1815  ;;  %1825 = vpow2.f32 %v967_v5  ;;  %v1005_v10 = vmul.f32 %v2039_v28, %v997_v3 }
 0x51b   :  { %v1818_v12 = vpop.eup %1817  ;;  %v996_v56 = vmul.f32 %v1816_v7, %v1556_v9  ;;  %v969_v13 = vmul.f32 1.442695, %v954_v6  ;;  %vm978_vm0 = vcmp.ne.f32.partialorder %v954_v6, 0.0 }
 0x51c   :  { %v995_v14 = vmul.f32 %v1818_v12, %v1555_v4  ;;  %v1026_v15 = vsel %vm1011_vm1, %v1005_v10, 0.0  ;;  %v1562_v55 = vsel %vm978_vm0, 1.0, %v1951_v8 }
 0x51d   :  { %1827 = vpow2.f32 %v969_v13  ;;  %v1004_v16 = vmul.f32 %v2039_v28, %v996_v56  ;;  %v1027_v53 = vrot.slane %v1026_v15, 4 }
 0x51e   :  { %v1003_v60 = vmul.f32 %v2039_v28, %v995_v14 }
 0x51f   :  { %v1820_v17 = vpop.eup %1819  ;;  %v1019_v19 = vsel %vm1011_vm1, %v1004_v16, 0.0  ;;  %1083 = vperm.xlu0 %1729, %v1004_v16   ;;  %v1028_v20 = vadd.f32 %v1027_v53, %v1026_v15 }
 0x520   :  { %v1822_v22 = vpop.eup %1821  ;;  %v998_v23 = vmul.f32 %v1820_v17, %v1558_v18  ;;  %v1020_v25 = vrot.slane %v1019_v19, 4  ;;  %1078 = vperm.xlu1 %1728, %v1003_v60   ;;  %v1012_v26 = vsel %vm1011_vm1, %v1003_v60, 0.0 }
 0x521   :  { %v999_v27 = vmul.f32 %v1822_v22, %v1559_v24  ;;  %v1013_v29 = vrot.slane %v1012_v26, 4  ;;  %v1029_v30 = vrot.slane %v1028_v20, 2 }
 0x522   :  { %v1006_v33 = vmul.f32 %v2039_v28, %v998_v23  ;;  %v1021_v36 = vadd.f32 %v1020_v25, %v1019_v19 }
 0x523   :  { %v1824_v32 = vpop.eup %1823  ;;  %v1014_v35 = vadd.f32 %v1013_v29, %v1012_v26  ;;  %v1030_v38 = vadd.f32 %v1029_v30, %v1028_v20  ;;  %v1007_v41 = vmul.f32 %v2039_v28, %v999_v27 }
 0x524   :  { %v1826_v45 = vpop.eup %1825  ;;  %v1000_v31 = vmul.f32 %v1824_v32, %v1560_v11  ;;  %1088 = vperm.xlu1 %1728, %v1005_v10   ;;  %v1033_v39 = vsel %vm1011_vm1, %v1006_v33, 0.0  ;;  %v1022_v2 = vrot.slane %v1021_v36, 2 }
 0x525   :  { %v1001_v40 = vmul.f32 %v1826_v45, %v1561_v34  ;;  %v1015_v51 = vrot.slane %v1014_v35, 2  ;;  %v1031_v52 = vrot.slane %v1030_v38, 1  ;;  %v1034_v54 = vrot.slane %v1033_v39, 4 }
 0x526   :  { %v1040_v57 = vsel %vm1011_vm1, %v1007_v41, 0.0  ;;  %v1008_v58 = vmul.f32 %v2039_v28, %v1000_v31  ;;  %v1023_v13 = vadd.f32 %v1022_v2, %v1021_v36 }
 0x527   :  { %v1828_v59 = vpop.eup %1827  ;;  %v1016_v61 = vadd.f32 %v1015_v51, %v1014_v35  ;;  %v1032_v62 = vadd.f32 %v1031_v52, %v1030_v38  ;;  %v1035_v63 = vadd.f32 %v1034_v54, %v1033_v39  ;;  %v1009_v0 = vmul.f32 %v2039_v28, %v1001_v40 }
 0x528   :  { %v1002_v1 = vmul.f32 %v1828_v59, %v1562_v55  ;;  %1093 = vperm.xlu1 %1728, %v1006_v33   ;;  %v1041_v3 = vrot.slane %v1040_v57, 4  ;;  %v1047_v5 = vsel %vm1011_vm1, %v1008_v58, 0.0  ;;  %v1024_v24 = vrot.slane %v1023_v13, 1  ;;  %v1847_v55 = vld [vmem:[#allocation2 + $0x30] sm:$0xff]  ;;  %v1848_v59 = vld [vmem:[#allocation2 + $0x38] sm:$0xff] }
 0x529   :  { %v1017_v21 = vrot.slane %v1016_v61, 1  ;;  %1829 = vrcp.f32 %v1032_v62  ;;  %v1036_v6 = vrot.slane %v1035_v63, 2  ;;  %v1054_v7 = vsel %vm1011_vm1, %v1009_v0, 0.0  ;;  %v1743_v62 = vld [vmem:[#allocation5 + $0x70] sm:$0xff]  }
 0x52a   :  { %v1055_v9 = vrot.slane %v1054_v7, 4  ;;  %v1042_v10 = vadd.f32 %v1041_v3, %v1040_v57  ;;  %v1010_v12 = vmul.f32 %v2039_v28, %v1002_v1  ;;  %v1048_v4 = vrot.slane %v1047_v5, 4  ;;  %1689 = vmatpush3.bf16.msra.mxu1 %v1743_v62  ;;  %v1744_v3 = vld [vmem:[#allocation5 + $0x78] sm:$0xff]  }
 0x52b   :  { %v1037_v56 = vadd.f32 %v1036_v6, %v1035_v63  ;;  %v1018_v53 = vadd.f32 %v1017_v21, %v1016_v61  ;;  %v1025_v35 = vadd.f32 %v1024_v24, %v1023_v13  ;;  %v1235_v57 = vpack.c.bf16 %v1847_v55, %v1847_v55  ;;  %1690 = vmatprep.subr.bf16.mxu1 %v1951_v8  ;;  %v1539_v6 = vld [vmem:[#allocation7 + $0x3] ss:$0 sm:$0xff] }
 0x52c   :  { %v1056_v14 = vadd.f32 %v1055_v9, %v1054_v7  ;;  %1108 = vperm.xlu1 %1728, %v1009_v0   ;;  %v1043_v15 = vrot.slane %v1042_v10, 2  ;;  %v1061_v16 = vsel %vm1011_vm1, %v1010_v12, 0.0  ;;  %v1049_v18 = vadd.f32 %v1048_v4, %v1047_v5 }
 0x52d   :  { %v1038_v60 = vrot.slane %v1037_v56, 1  ;;  %v1062_v17 = vrot.slane %v1061_v16, 4  ;;  %1831 = vrcp.f32 %v1018_v53  ;;  %v1236_v61 = vpack.c.bf16 %v1848_v59, %v1848_v59 }
 0x52e   :  { %v1057_v19 = vrot.slane %v1056_v14, 2  ;;  %v1044_v20 = vadd.f32 %v1043_v15, %v1042_v10  ;;  %v1050_v23 = vrot.slane %v1049_v18, 2  ;;  %v1342_v63 = vunpack.c.l.b16 %v1235_v57  ;;  %1691 = vmatpush3.bf16.msra.mxu1 %v1744_v3 }
 0x52f   :  { %v1063_v22 = vadd.f32 %v1062_v17, %v1061_v16  ;;  %v1039_v28 = vadd.f32 %v1038_v60, %v1037_v56  ;;  %v1343_v0 = vunpack.c.l.b16 %v1236_v61  ;;  %1696 = vmatprep.subr.bf16.mxu1 %v1951_v8  ;;  %v757_v9 = vadd.f32 %v1539_v6, %v2126_v43 }
 0x530   :  { %v1058_v25 = vadd.f32 %v1057_v19, %v1056_v14  ;;  %v1045_v26 = vrot.slane %v1044_v20, 1  ;;  %1098 = vperm.xlu1 %1728, %v1007_v41   ;;  %v1051_v29 = vadd.f32 %v1050_v23, %v1049_v18  ;;  %v1354_v1 = vrot.slane %v1342_v63, 2 }
 0x531   :  { %v1064_v27 = vrot.slane %v1063_v22, 2  ;;  %v1356_v2 = vrot.slane %v1343_v0, 1  ;;  %v765_v10 = vadd.f32 %v2124_v42, %v1539_v6  ;;  %v760_v14 = vadd.f32 %v1539_v6, %v2130_v46 }
 0x532   :  { %v1059_v30 = vrot.slane %v1058_v25, 1  ;;  %v1046_v11 = vadd.f32 %v1045_v26, %v1044_v20  ;;  %v1052_v45 = vrot.slane %v1051_v29, 1  ;;  %v1355_v5 = vsel %vm417_vm12, %v1354_v1, %v2021_v37 }
 0x533   :  { %v1830_v33 = vpop.eup %1829  ;;  %v1065_v38 = vadd.f32 %v1064_v27, %v1063_v22  ;;  %v2177_v21 = vsel %vm419_vm13, %v1356_v2, %v1355_v5  ;;  %v768_v15 = vadd.f32 %v2128_v44, %v1539_v6  ;;  %v781_v43 = vadd.f32 %v2132_v47, %v1539_v6 }
 0x534   :  { %v1060_v32 = vadd.f32 %v1059_v30, %v1058_v25  ;;  %1833 = vrcp.f32 %v1046_v11  ;;  %1192 = vperm.xlu0 %1729, %v1830_v33   ;;  %1113 = vperm.xlu1 %1728, %v1010_v12   ;;  %v1053_v41 = vadd.f32 %v1052_v45, %v1051_v29  ;;  %v773_v44 = vadd.f32 %v1539_v6, %v2134_v48 }
 0x535   :  { %1835 = vrcp.f32 %v1039_v28  ;;  %v1066_v31 = vrot.slane %v1065_v38, 1  ;;  %v784_v33 = vadd.f32 %v2136_v49, %v1539_v6 }
 0x536   :  { %1837 = vrcp.f32 %v1060_v32 }
 0x537   :  { %1839 = vrcp.f32 %v1025_v35  ;;  %v1832_v34 = vpop.eup %1831  ;;  %v1067_v36 = vadd.f32 %v1066_v31, %v1065_v38 }
 0x538   :  { %1103 = vperm.xlu1 %1728, %v1008_v58   ;;  %1841 = vrcp.f32 %v1053_v41 }
 0x539   :  { %1843 = vrcp.f32 %v1067_v36 }
 0x53c   :  { %1182 = vperm.xlu1 %1728, %v1832_v34  }
 0x53e   :  { %v1834_v39 = vpop.eup %1833 }
 0x53f   :  { %v1836_v40 = vpop.eup %1835  ;;  %1202 = vperm.xlu0 %1729, %v1834_v39  }
 0x540   :  { %v1838_v51 = vpop.eup %1837  ;;  %1197 = vperm.xlu1 %1728, %v1836_v40   ;;  %v776_v40 = vadd.f32 %v1539_v6, %v2138_v50 }
 0x541   :  { %v1840_v52 = vpop.eup %1839 }
 0x542   :  { %v1842_v54 = vpop.eup %1841 }
 0x543   :  { %1212 = vperm.xlu0 %1729, %v1838_v51   ;;  %v1844_v58 = vpop.eup %1843 }
 0x544   :  { %1187 = vperm.xlu1 %1728, %v1840_v52  }
 0x548   :  { %1207 = vperm.xlu1 %1728, %v1842_v54  }
 0x54c   :  { %1217 = vperm.xlu1 %1728, %v1844_v58  }
 0x59e   :  { %v1084_v4 = vpop.permute.xlu0 %1083 }
 0x59f   :  { %v1079_v7 = vpop.permute.xlu1 %1078  ;;  %v1117_v37 = vmul.f32 %v1084_v4, %v760_v14 }
 0x5a0   :  { %v1116_v12 = vmul.f32 %v1079_v7, %v757_v9 }
 0x5a1   :  { %v1131_v20 = vsel %vm314_vm11, %v1117_v37, 0.0 }
 0x5a2   :  { %v1124_v53 = vsel %vm314_vm11, %v1116_v12, 0.0  ;;  %v1132_v25 = vrot.slane %v1131_v20, 4 }
 0x5a3   :  { %v1089_v56 = vpop.permute.xlu1 %1088  ;;  %v1125_v19 = vrot.slane %v1124_v53, 4 }
 0x5a4   :  { %v1118_v13 = vmul.f32 %v1089_v56, %v765_v10  ;;  %v1133_v32 = vadd.f32 %v1132_v25, %v1131_v20 }
 0x5a5   :  { %v1126_v26 = vadd.f32 %v1125_v19, %v1124_v53 }
 0x5a6   :  { %v1138_v16 = vsel %vm314_vm11, %v1118_v13, 0.0  ;;  %v1134_v51 = vrot.slane %v1133_v32, 2 }
 0x5a7   :  { %v1094_v60 = vpop.permute.xlu1 %1093  ;;  %v1139_v18 = vrot.slane %v1138_v16, 4  ;;  %v1127_v35 = vrot.slane %v1126_v26, 2 }
 0x5a8   :  { %v1119_v17 = vmul.f32 %v1094_v60, %v768_v15  ;;  %v1135_v5 = vadd.f32 %v1134_v51, %v1133_v32 }
 0x5a9   :  { %v1140_v24 = vadd.f32 %v1139_v18, %v1138_v16  ;;  %v1128_v54 = vadd.f32 %v1127_v35, %v1126_v26 }
 0x5aa   :  { %v1145_v42 = vsel %vm314_vm11, %v1119_v17, 0.0  ;;  %v1136_v15 = vrot.slane %v1135_v5, 1 }
 0x5ab   :  { %v1109_v22 = vpop.permute.xlu1 %1108  ;;  %v1146_v23 = vrot.slane %v1145_v42, 4  ;;  %v1141_v47 = vrot.slane %v1140_v24, 2  ;;  %v1129_v3 = vrot.slane %v1128_v54, 1 }
 0x5ac   :  { %v1122_v46 = vmul.f32 %v1109_v22, %v781_v43  ;;  %v1137_v22 = vadd.f32 %v1136_v15, %v1135_v5 }
 0x5ad   :  { %v1147_v30 = vadd.f32 %v1146_v23, %v1145_v42  ;;  %v1142_v39 = vadd.f32 %v1141_v47, %v1140_v24  ;;  %v1130_v13 = vadd.f32 %v1129_v3, %v1128_v54 }
 0x5ae   :  { %v1166_v28 = vsel %vm314_vm11, %v1122_v46, 0.0 }
 0x5af   :  { %v1167_v27 = vrot.slane %v1166_v28, 4  ;;  %v1099_v29 = vpop.permute.xlu1 %1098  ;;  %v1148_v34 = vrot.slane %v1147_v30, 2  ;;  %v1143_v62 = vrot.slane %v1142_v39, 1 }
 0x5b0   :  { %v1120_v11 = vmul.f32 %v1099_v29, %v773_v44 }
 0x5b1   :  { %v1168_v45 = vadd.f32 %v1167_v27, %v1166_v28  ;;  %v1149_v61 = vadd.f32 %v1148_v34, %v1147_v30  ;;  %v1144_v12 = vadd.f32 %v1143_v62, %v1142_v39 }
 0x5b2   :  { %v1152_v38 = vsel %vm314_vm11, %v1120_v11, 0.0 }
 0x5b3   :  { %v1153_v31 = vrot.slane %v1152_v38, 4  ;;  %v1114_v41 = vpop.permute.xlu1 %1113  ;;  %v1169_v55 = vrot.slane %v1168_v45, 2  ;;  %v1193_v1 = vpop.permute.xlu0 %1192  ;;  %v1150_v10 = vrot.slane %v1149_v61, 1 }
 0x5b4   :  { %v1123_v48 = vmul.f32 %v1114_v41, %v784_v33  ;;  %v1222_v43 = vmul.f32 %v1193_v1, %v1144_v12  ;;  %v1228_v1 = vld [vmem:[#allocation5 + $0x68] sm:$0x7] }
 0x5b5   :  { %v1154_v36 = vadd.f32 %v1153_v31, %v1152_v38  ;;  %v1170_v9 = vadd.f32 %v1169_v55, %v1168_v45  ;;  %v1151_v18 = vadd.f32 %v1150_v10, %v1149_v61  ;;  %v1748_v10 = vld [vmem:[#allocation5 + $0x98] sm:$0xff]  }
 0x5b6   :  { %v1173_v52 = vsel %vm314_vm11, %v1123_v48, 0.0  ;;  %v1243_v27 = vpack.c.bf16 %v1222_v43, %v1222_v43  ;;  %v1568_v43 = vld [vmem:[#allocation7 + $0x8] ss:$0 sm:$0xff] }
 0x5b7   :  { %v1155_v57 = vrot.slane %v1154_v36, 2  ;;  %v1174_v49 = vrot.slane %v1173_v52, 4  ;;  %v1104_v58 = vpop.permute.xlu1 %1103  ;;  %v1171_v60 = vrot.slane %v1170_v9, 1 }
 0x5b8   :  { %v1121_v59 = vmul.f32 %v1104_v58, %v776_v40  ;;  %v1259_v41 = vunpack.c.l.b16 %v1243_v27 }
 0x5b9   :  { %v1156_v63 = vadd.f32 %v1155_v57, %v1154_v36  ;;  %v1175_v0 = vadd.f32 %v1174_v49, %v1173_v52  ;;  %v1172_v24 = vadd.f32 %v1171_v60, %v1170_v9  ;;  %v1747_v9 = vld [vmem:[#allocation5 + $0x90] sm:$0xff]  }
 0x5ba   :  { %v1159_v2 = vsel %vm314_vm11, %v1121_v59, 0.0 }
 0x5bb   :  { %v1160_v7 = vrot.slane %v1159_v2, 4  ;;  %v1183_v50 = vpop.permute.xlu1 %1182  ;;  %v1157_v6 = vrot.slane %v1156_v63, 1  ;;  %v1176_v4 = vrot.slane %v1175_v0, 2 }
 0x5bc   :  { %v1220_v17 = vmul.f32 %v1183_v50, %v1130_v13  ;;  %v1745_v50 = vld [vmem:[#allocation5 + $0x80] sm:$0xff]  }
 0x5bd   :  { %v1161_v56 = vadd.f32 %v1160_v7, %v1159_v2  ;;  %v1158_v37 = vadd.f32 %v1157_v6, %v1156_v63  ;;  %v1177_v23 = vadd.f32 %v1176_v4, %v1175_v0  ;;  %v1358_v7 = vpack.c.b16 %v2177_v21, %v2177_v21  ;;  %1703 = vmatpush3.bf16.msra.mxu0 %v1745_v50  ;;  %v1746_v6 = vld [vmem:[#allocation5 + $0x88] sm:$0xff]  }
 0x5be   :  { %v1203_v14 = vpop.permute.xlu0 %1202  ;;  %v1241_v26 = vpack.c.bf16 %v1220_v17, %v1220_v17  ;;  %1704 = vmatprep.subr.bf16.mxu0 %v1951_v8 }
 0x5bf   :  { %v1162_v16 = vrot.slane %v1161_v56, 2  ;;  %v1198_v53 = vpop.permute.xlu1 %1197  ;;  %v1224_v46 = vmul.f32 %v1203_v14, %v1158_v37  ;;  %v1178_v33 = vrot.slane %v1177_v23, 1  ;;  %v1567_v14 = vld [vmem:[#allocation7 + $0x7] ss:$0 sm:$0xff] }
 0x5c0   :  { %v1223_v42 = vmul.f32 %v1198_v53, %v1151_v18  ;;  %v1257_v38 = vunpack.c.l.b16 %v1241_v26 }
 0x5c1   :  { %v1163_v19 = vadd.f32 %v1162_v16, %v1161_v56  ;;  %v1245_v32 = vpack.c.bf16 %v1224_v46, %v1224_v46  ;;  %v1179_v40 = vadd.f32 %v1178_v33, %v1177_v23  ;;  %1705 = vmatpush3.bf16.msra.mxu0 %v1746_v6 }
 0x5c2   :  { %v1213_v20 = vpop.permute.xlu0 %1212  ;;  %v1244_v11 = vpack.c.bf16 %v1223_v42, %v1223_v42  ;;  %1706 = vmatprep.subr.bf16.mxu0 %v1951_v8 }
 0x5c3   :  { %v1188_v44 = vpop.permute.xlu1 %1187  ;;  %v1164_v25 = vrot.slane %v1163_v19, 1  ;;  %v1226_v29 = vmul.f32 %v1213_v20, %v1172_v24  ;;  %v1261_v51 = vunpack.c.l.b16 %v1245_v32 }
 0x5c4   :  { %v1221_v28 = vmul.f32 %v1188_v44, %v1137_v22  ;;  %v1260_v48 = vunpack.c.l.b16 %v1244_v11 }
 0x5c5   :  { %v1165_v30 = vadd.f32 %v1164_v25, %v1163_v19  ;;  %v1247_v34 = vpack.c.bf16 %v1226_v29, %v1226_v29  ;;  %1707 = vmatpush3.bf16.msra.mxu0 %v1747_v9 }
 0x5c6   :  { %v1242_v47 = vpack.c.bf16 %v1221_v28, %v1221_v28  ;;  %1708 = vmatprep.subr.bf16.mxu0 %v1951_v8 }
 0x5c7   :  { %v1208_v35 = vpop.permute.xlu1 %1207  ;;  %v1263_v58 = vunpack.c.l.b16 %v1247_v34 }
 0x5c8   :  { %v1258_v45 = vunpack.c.l.b16 %v1242_v47  ;;  %v1225_v31 = vmul.f32 %v1208_v35, %v1165_v30 }
 0x5c9   :  { %1709 = vmatpush3.bf16.msra.mxu0 %v1748_v10 }
 0x5ca   :  { %v1265_v36 = vsel %vm407_vm3, %v1258_v45, %v1257_v38  ;;  %v1246_v39 = vpack.c.bf16 %v1225_v31, %v1225_v31  ;;  %vm1363_vm3 = vcmask 1042432  }
 0x5cb   :  { %v1266_v52 = vsel %vm409_vm4, %v1259_v41, %v1265_v36  ;;  %v1218_v54 = vpop.permute.xlu1 %1217  ;;  %v1365_v5 = vsel %vm1363_vm3, %v1228_v1, 0  ;;  %vm1359_vm4 = vcmask 48128  }
 0x5cc   :  { %v1262_v55 = vunpack.c.l.b16 %v1246_v39  ;;  %v1267_v57 = vsel %vm411_vm5, %v1260_v48, %v1266_v52  ;;  %v1227_v49 = vmul.f32 %v1218_v54, %v1179_v40 }
 0x5cd   :  { %v1268_v59 = vsel %vm413_vm6, %v1261_v51, %v1267_v57 }
 0x5ce   :  { %v1269_v61 = vsel %vm415_vm7, %v1262_v55, %v1268_v59  ;;  %v1248_v62 = vpack.c.bf16 %v1227_v49, %v1227_v49 }
 0x5cf   :  { %v1270_v63 = vsel %vm417_vm12, %v1263_v58, %v1269_v61 }
 0x5d0   :  { %v1264_v0 = vunpack.c.l.b16 %v1248_v62 }
 0x5d2   :  { %v1271_v2 = vsel %vm419_vm13, %v1264_v0, %v1270_v63 }
 0x5d3   :  { %v1272_v3 = vpack.c.b16 %v1271_v2, %v1271_v2 }
 0x5d5   :  { %1693 = vmatmul.mubr.msk.bf16.vlgmr.msra.gmra.mrb[16].mxu1 %vm314_vm11, %v1272_v3 }
 0x5d6   :  { %1697 = vmatpush3.bf16.msra.mxu1 %v1365_v5  ;;  %1698 = vmatprep.mubr.msk.bf16.mxu1 %vm1952_vm9, %v1951_v8 }
 0x5dd   :  { %1699 = vmatmul.mubr.msk.bf16.vlgmr.msra.gmra.mrb[20].mxu1 %vm1359_vm4, %v1358_v7 }
 0x6a8   :  { %v1322_v12 = vpop.f32.mrb[16].mxu1 }
 0x6a9   :  { %v1694_v56 = vpop.f32.mrb[17].mxu1 }
 0x6aa   :  { %v1325_v4 = vpop.f32.mrb[18].mxu1 }
 0x6ab   :  { %v1695_v21 = vpop.f32.mrb[19].mxu1 }
 0x6b0   :  { %v1401_v13 = vpop.f32.mrb[20].mxu1 }
 0x6b1   :  { %v1402_v15 = vadd.f32 %v1401_v13, %v1322_v12  ;;  %v1700_v16 = vpop.f32.mrb[21].mxu1 }
 0x6b2   :  { %v1404_v37 = vpop.f32.mrb[22].mxu1 }
 0x6b3   :  { %v1412_v53 = vadd.f32 %v1567_v14, %v1402_v15  ;;  %v1701_v60 = vpop.f32.mrb[23].mxu1 }
 0x6b5   :  { %1845 = vtanh.f32 %v1412_v53 }
 0x6bf   :  { %v1846_v17 = vpop.eup %1845 }
 0x6c0   :  { %v1422_v18 = vpack.c.bf16 %v1846_v17, %v1846_v17 }
 0x6c2   :  { %1711 = vmatmul.mubr.msk.bf16.vlgmr.msra.gmra.mrb[28].mxu0 %vm215_vm8, %v1422_v18 }
 0x795   :  { %v1489_v19 = vpop.f32.mrb[28].mxu0 }
 0x796   :  { %v1490_v8 = vadd.f32 %v1568_v43, %v1489_v19  ;;  %v1712_v42 = vpop.f32.mrb[29].mxu0 }
 0x797   :  { %v1492_v20 = vpop.f32.mrb[30].mxu0 }
 0x798   :  { %v1495_v22 = vpack.c.bf16 %v1490_v8, %v1490_v8  ;;  %v1713_v23 = vpop.f32.mrb[31].mxu0 }
 0x79a   :  { %1496 = vst [vmem:[#allocation8] sm:$0xf] %v1495_v22 }
 0x79b   :  { %1926 = shalt.err (!%p1923_p0)
}
 0x79c   :  { %s1927_s28 = scalar_lea.hbm %s2226_s3, 64 }
 0x79d   :  { %p1928_p1 = scmp.ne.s32.totalorder %s2226_s3, %s1927_s28  ;;  %p1931_p2 = scmp.lt.u32.totalorder %s1927_s28, %s2226_s3 }
 0x79f   :  { %p1933_p3 = pnand %p1931_p2, %p1928_p1 }
 0x7a1   :  { %1936 = shalt.err (!%p1933_p3)
}
 0x7a2   :  { %1506 = dma.vmem_to_hbm [thread:$0]  %s1504_s24, 64, %s2226_s3, [#allocation4]  }
 0x7a3   :  { %1941 = dma.done.wait [#allocation4], 64  }
 0x7a4   :  { %1942 = vsyncadd [#allocation4], 4294967232 }
 0x7a5   :  { %1510 = vsyncpa [#allocation3], 1 }
 0x7a6   :  { %1511 = vsyncpa [#allocation6], 1 }
 0x7a7   :  { %1512 = vsyncpa [#allocation4], 1 }

</bundles_post_ra>
